<compile_context>
chip_gen: v7x
topology: tpu7x:2x2x1
jax: 0.10.0
libtpu: 0.0.40
codegen_flags: <defaults>
</compile_context>

<pallas_src>
import functools

import jax
import jax.numpy as jnp
from jax import lax
from jax.experimental import pallas as pl
from jax.experimental.pallas import tpu as pltpu


def _round_up(x, m):
    return ((x + m - 1) // m) * m


def _vmem_capacity_bytes():
    """Physical VMEM of the attached TPU; conservative 64 MiB (v7x-sized) fallback."""
    try:
        cap = getattr(pltpu.get_tpu_info(), "vmem_capacity_bytes", None)
        if cap:
            return int(cap)
    except Exception:
        pass
    return 64 * 1024 * 1024


def _resident_vmem_bytes(Np, Fp, Hp, Cp):
    dbl = 2  # conservative: assume every pipelined block is double-buffered
    blocks = dbl * (Np * Np * 2 + Np * Fp * 4 + Np * 4
                    + Fp * Hp * 2 + Hp * Cp * 2 + Np * Cp * 4)
    scratch = Np * Fp * 2 + Np * Fp * 4                    # u (bf16) + y (f32)
    temps = 2 * Np * Fp * 4 + Np * Hp * 4                  # p / x_new / h live values
    return blocks + scratch + temps


def _streamed_vmem_bytes(Np, Fp, Hp, Cp, tile):
    dbl = 2
    blocks = dbl * (tile * tile * 1 + tile * Fp * 4 + 2 * tile * 4
                    + Fp * Hp * 2 + Hp * Cp * 2 + tile * Cp * 4)
    scratch = 2 * Np * Fp * 2 + Np * Fp * 4 + tile * Fp * 4   # u (2 slots) + y + acc
    temps = tile * tile * 2 + 2 * tile * Fp * 4 + tile * Hp * 4
    return blocks + scratch + temps


# ---------------------------------------------------------------------------
# Resident-adjacency kernel: everything lives in VMEM, K steps run in-kernel.
# ---------------------------------------------------------------------------
def _grand_resident_kernel(adj_ref, feats_ref, norm_ref, w1_ref, w2_ref, o_ref,
                           u_ref, y_ref, *, n_steps):
    nrm = norm_ref[...]                                    # [Np, 1] deg^{-1/2}
    f = feats_ref[...]                                     # [Np, Fp] f32
    y_ref[...] = f                                         # y = x_0
    u_ref[...] = (nrm * f).astype(u_ref.dtype)             # u_0 = D^-1/2 x_0 (bf16)

    for _ in range(n_steps):                               # K is small & static -> unrolled
        # p = A^T u_k ; lhs-transposed contraction so adj.T is never materialized.
        p = lax.dot_general(adj_ref[...], u_ref[...],
                            (((0,), (0,)), ((), ())),
                            preferred_element_type=jnp.float32)
        y_ref[...] = y_ref[...] + nrm * p                  # y += x_{k+1} = D^-1/2 p
        u_ref[...] = ((nrm * nrm) * p).astype(u_ref.dtype)  # u_{k+1} = D^-1/2 x_{k+1}

    # 2-layer bias-free MLP (drop-node / (K+1) scale already folded into w1),
    # bf16 MXU operands, f32 accumulation.
    h = jnp.dot(y_ref[...].astype(jnp.bfloat16), w1_ref[...],
                preferred_element_type=jnp.float32)
    h = jnp.maximum(h, 0.0).astype(jnp.bfloat16)
    o_ref[...] = jnp.dot(h, w2_ref[...],
                         preferred_element_type=jnp.float32).astype(o_ref.dtype)


# ---------------------------------------------------------------------------
# Streamed (tiled) kernel: int8 adjacency streamed from HBM, K times.
# ---------------------------------------------------------------------------
def _grand_streamed_kernel(adj_ref, feats_ref, nsrc_ref, ndst_ref, w1_ref, w2_ref,
                           o_ref, u_ref, y_ref, acc_ref, *, n_steps, tile, n_rows):
    """Grid = (propagation step k, dest row tile i, source/contraction tile j).

    NOTE: k MUST remain the outermost grid axis.  The output block of dest tile i is
    revisited every step (garbage-then-final writeback); this is only correct because
    the last (k == K-1) pass is the final one to touch each output block.
    """
    k = pl.program_id(0)
    i = pl.program_id(1)
    j = pl.program_id(2)
    nj = pl.num_programs(2)

    cur = k % 2                                    # slot holding u_k; u_{k+1} -> 1 - cur
    row_i = pl.multiple_of(i * tile, tile)
    row_j = pl.multiple_of(j * tile, tile)
    cur_j = pl.multiple_of(cur * n_rows + row_j, tile)
    nxt_i = pl.multiple_of((1 - cur) * n_rows + row_i, tile)

    # One-time init during (step 0, first dest tile):
    #   y   = x_0 = feats          (drop_node / (K+1) scales are folded into w1)
    #   u_0 = D^{-1/2} x_0         (bf16, slot 0 since cur == 0 here)
    @pl.when((k == 0) & (i == 0))
    def _init():
        f = feats_ref[...]                         # [T, Fp] f32, source block j
        y_ref[pl.ds(row_j, tile), :] = f
        u_ref[pl.ds(row_j, tile), :] = (nsrc_ref[...] * f).astype(u_ref.dtype)

    # acc[dest i] (+)= A[src j, dest i]^T @ u_k[src j]
    # int8 tile -> bf16 (VPU, hidden under the DMA) -> MXU with f32 accumulation;
    # the lhs-transposed contraction avoids ever materializing adj.T.
    prod = lax.dot_general(adj_ref[...].astype(jnp.bfloat16),
                           u_ref[pl.ds(cur_j, tile), :],
                           (((0,), (0,)), ((), ())),
                           preferred_element_type=jnp.float32)

    @pl.when(j == 0)
    def _first():
        acc_ref[...] = prod                        # direct write: no zero + RMW pass

    @pl.when(j > 0)
    def _accum():
        acc_ref[...] += prod

    # Contraction over j finished for this (step, dest tile): apply D^{-1/2},
    # update the running sum y and the next-step state u_{k+1}.
    @pl.when(j == nj - 1)
    def _finish():
        nrm = ndst_ref[...]                        # [T, 1] deg^{-1/2}, dest block i
        p = acc_ref[...]
        y_ref[pl.ds(row_i, tile), :] = y_ref[pl.ds(row_i, tile), :] + nrm * p
        u_ref[pl.ds(nxt_i, tile), :] = ((nrm * nrm) * p).astype(u_ref.dtype)

        # Last propagation step: this row tile's y is final -> MLP straight from VMEM.
        @pl.when(k == n_steps - 1)
        def _mlp():
            yv = y_ref[pl.ds(row_i, tile), :].astype(jnp.bfloat16)
            h = jnp.dot(yv, w1_ref[...], preferred_element_type=jnp.float32)
            h = jnp.maximum(h, 0.0).astype(jnp.bfloat16)
            o_ref[...] = jnp.dot(h, w2_ref[...],
                                 preferred_element_type=jnp.float32).astype(o_ref.dtype)


# ---------------------------------------------------------------------------
# Wrapper
# ---------------------------------------------------------------------------
def grand_forward(adj, feats, w1, w2, *, K=4, dropout=0.5, force_streamed=False):
    """Eval-mode GRAND forward.

    adj:   dense [N, N], adj[u, v] != 0 iff edge u -> v.  Assumed binary / unweighted
           (as produced by DGL graphs); streamed path stores it as int8 (0/1 exact).
    feats: [N, F].  w1: [F, H], w2: [H, C] (bias-free MLP).  Returns [N, C] float32.
    """
    assert K >= 1
    N, F = feats.shape
    H = w1.shape[1]
    C = w2.shape[1]
    f32 = jnp.float32

    Fp, Hp, Cp = (_round_up(d, 128) for d in (F, H, C))

    # Cheap wrapper-side glue: in-degrees (clamped >= 1) and the D^{-1/2} vector.
    degs = jnp.clip(jnp.sum(adj.astype(f32), axis=0), 1.0)
    norm = degs ** -0.5

    # Fold eval-mode drop_node scaling and the 1/(K+1) average into w1 (bf16 operand).
    scale = (1.0 - dropout) / (K + 1.0)
    w1_p = jnp.pad((w1.astype(f32) * scale).astype(jnp.bfloat16),
                   ((0, Fp - F), (0, Hp - H)))
    w2_p = jnp.pad(w2.astype(jnp.bfloat16), ((0, Hp - H), (0, Cp - C)))

    vmem_cap = _vmem_capacity_bytes()

    # ------------------------- resident fast path -------------------------
    Np_r = _round_up(N, 128)
    use_resident = (not force_streamed) and \
        _resident_vmem_bytes(Np_r, Fp, Hp, Cp) <= int(0.6 * vmem_cap)

    if use_resident:
        Np = Np_r
        adj_p = jnp.pad(adj.astype(jnp.bfloat16), ((0, Np - N), (0, Np - N)))
        feats_p = jnp.pad(feats.astype(f32), ((0, Np - N), (0, Fp - F)))
        norm_p = jnp.pad(norm[:, None].astype(f32), ((0, Np - N), (0, 0)),
                         constant_values=1.0)
        limit = int(min(0.9 * vmem_cap,
                        max(_resident_vmem_bytes(Np, Fp, Hp, Cp) + (8 << 20),
                            32 << 20)))
        kernel = functools.partial(_grand_resident_kernel, n_steps=K)
        out_p = pl.pallas_call(
            kernel,
            out_shape=jax.ShapeDtypeStruct((Np, Cp), f32),
            grid_spec=pltpu.PrefetchScalarGridSpec(
                num_scalar_prefetch=0,
                grid=(1,),
                in_specs=[
                    pl.BlockSpec((Np, Np), lambda i: (0, 0)),   # adj (bf16, VMEM resident)
                    pl.BlockSpec((Np, Fp), lambda i: (0, 0)),   # feats
                    pl.BlockSpec((Np, 1), lambda i: (0, 0)),    # deg^{-1/2}
                    pl.BlockSpec((Fp, Hp), lambda i: (0, 0)),   # w1 (bf16)
                    pl.BlockSpec((Hp, Cp), lambda i: (0, 0)),   # w2 (bf16)
                ],
                out_specs=pl.BlockSpec((Np, Cp), lambda i: (0, 0)),
                scratch_shapes=[
                    pltpu.VMEM((Np, Fp), jnp.bfloat16),         # u_k
                    pltpu.VMEM((Np, Fp), f32),                  # y = sum_t x_t
                ],
            ),
            compiler_params=pltpu.CompilerParams(
                dimension_semantics=("arbitrary",),
                vmem_limit_bytes=limit,
            ),
        )(adj_p, feats_p, norm_p, w1_p, w2_p)
        return out_p[:N, :C]

    # ------------------------- streamed (tiled) path -------------------------
    tile = 512                                   # guaranteed: Np padded to 512 multiple
    Np = _round_up(N, tile)
    nr = Np // tile
    adj_p = jnp.pad(adj.astype(jnp.int8), ((0, Np - N), (0, Np - N)))   # 0/1 exact
    feats_p = jnp.pad(feats.astype(f32), ((0, Np - N), (0, Fp - F)))
    norm_p = jnp.pad(norm[:, None].astype(f32), ((0, Np - N), (0, 0)),
                     constant_values=1.0)
    limit = int(min(0.9 * vmem_cap,
                    max(_streamed_vmem_bytes(Np, Fp, Hp, Cp, tile) + (8 << 20),
                        32 << 20)))
    kernel = functools.partial(_grand_streamed_kernel, n_steps=K, tile=tile, n_rows=Np)

    out_p = pl.pallas_call(
        kernel,
        out_shape=jax.ShapeDtypeStruct((Np, Cp), f32),
        grid_spec=pltpu.PrefetchScalarGridSpec(
            num_scalar_prefetch=0,
            grid=(K, nr, nr),                    # k MUST stay outermost (see kernel note)
            in_specs=[
                # adjacency tile [src block j, dest block i]; int8 stream, read K times
                pl.BlockSpec((tile, tile), lambda k, i, j: (j, i)),
                # features: only read at (k==0, i==0); freeze the index afterwards so
                # the pipeline stops re-fetching them
                pl.BlockSpec((tile, Fp),
                             lambda k, i, j: (jnp.where((k == 0) & (i == 0), j, 0), 0)),
                # D^{-1/2}, source-block view (init only)
                pl.BlockSpec((tile, 1),
                             lambda k, i, j: (jnp.where((k == 0) & (i == 0), j, 0), 0)),
                # D^{-1/2}, dest-block view
                pl.BlockSpec((tile, 1), lambda k, i, j: (i, 0)),
                # MLP weights (bf16), resident in VMEM
                pl.BlockSpec((Fp, Hp), lambda k, i, j: (0, 0)),
                pl.BlockSpec((Hp, Cp), lambda k, i, j: (0, 0)),
            ],
            out_specs=pl.BlockSpec((tile, Cp), lambda k, i, j: (i, 0)),
            scratch_shapes=[
                pltpu.VMEM((2 * Np, Fp), jnp.bfloat16),   # u_k / u_{k+1} (two slots)
                pltpu.VMEM((Np, Fp), f32),                # y = sum_t x_t
                pltpu.VMEM((tile, Fp), f32),              # per-(k, dest tile) accumulator
            ],
        ),
        compiler_params=pltpu.CompilerParams(
            # all axes carry state through VMEM scratch -> arbitrary
            dimension_semantics=("arbitrary", "arbitrary", "arbitrary"),
            vmem_limit_bytes=limit,
        ),
    )(adj_p, feats_p, norm_p, norm_p, w1_p, w2_p)

    return out_p[:N, :C]


# ---------------------------------------------------------------------------
# Pure-JAX f32 reference mirroring the PyTorch eval forward.
# ---------------------------------------------------------------------------
def grand_reference(adj, feats, w1, w2, *, K=4, dropout=0.5):
    degs = jnp.clip(jnp.sum(adj, axis=0), 1.0)
    norm = degs ** -0.5
    ahat = norm[:, None] * adj.T * norm[None, :]
    x = feats * (1.0 - dropout)
    y = x
    for _ in range(K):
        x = ahat @ x
        y = y + x
    y = y / (K + 1)
    h = jnp.maximum(y @ w1, 0.0)
    return h @ w2


def _make_inputs(key, n, f, h, c, density):
    k_adj, k_x, k_w1, k_w2 = jax.random.split(key, 4)
    upper = (jax.random.uniform(k_adj, (n, n)) < density).astype(jnp.float32)
    upper = jnp.triu(upper, k=1)
    adj = upper + upper.T                      # undirected, no self loops, binary
    feats = jax.random.normal(k_x, (n, f), dtype=jnp.float32)
    w1 = jax.random.normal(k_w1, (f, h), dtype=jnp.float32) / jnp.sqrt(f)
    w2 = jax.random.normal(k_w2, (h, c), dtype=jnp.float32) / jnp.sqrt(h)
    return adj, feats, w1, w2


if __name__ == "__main__":
    root = jax.random.PRNGKey(0)
    keys = jax.random.split(root, 3)

    # (N, F, H, C, K, dropout, density): small, padded, and multi-tile (streamed) cases.
    cases = [
        (48, 16, 16, 8, 4, 0.5, 0.20),
        (300, 24, 40, 7, 3, 0.3, 0.10),
        (700, 32, 48, 10, 2, 0.5, 0.05),
    ]
    for ck, (n, f, h, c, kk, p, dens) in zip(keys, cases):
        adj, feats, w1, w2 = _make_inputs(ck, n, f, h, c, dens)
        ref = grand_reference(adj, feats, w1, w2, K=kk, dropout=p)
        for force in (False, True):            # resident fast path + streamed tiled path
            out = grand_forward(adj, feats, w1, w2, K=kk, dropout=p,
                                force_streamed=force)
            out = jax.block_until_ready(out)
            assert out.shape == (n, c)
            err = float(jnp.max(jnp.abs(out - ref)))
            # bf16 adjacency / state / MLP streams -> small bounded deviation vs f32 ref
            assert jnp.allclose(out, ref, atol=2e-2, rtol=2e-2), (
                f"mismatch vs reference (N={n}, streamed={force}): max abs err {err}")

    print("KERNEL_OK")
</pallas_src>

<mosaic_0001>
module attributes {stable_mosaic.version = 11 : i64} {
  func.func @_grand_resident_kernel(%arg0: i32, %arg1: memref<128x128xbf16, #tpu.memory_space<vmem>>, %arg2: memref<128x128xf32, #tpu.memory_space<vmem>>, %arg3: memref<128x1xf32, #tpu.memory_space<vmem>>, %arg4: memref<128x128xbf16, #tpu.memory_space<vmem>>, %arg5: memref<128x128xbf16, #tpu.memory_space<vmem>>, %arg6: memref<128x128xf32, #tpu.memory_space<vmem>>, %arg7: memref<128x128xbf16, #tpu.memory_space<vmem>>, %arg8: memref<128x128xf32, #tpu.memory_space<vmem>>) attributes {dimension_semantics = [#tpu.dimension_semantics<arbitrary>], iteration_bounds = array<i64: 1>, scalar_prefetch = 0 : i64, scratch_operands = 2 : i64, tpu.core_type = #tpu.core_type<tc>, window_params = [{pipeline_mode = #tpu.pipeline_mode<synchronous>, transform_indices = @transform_0, window_bounds = array<i64: 128, 128>}, {pipeline_mode = #tpu.pipeline_mode<synchronous>, transform_indices = @transform_1, window_bounds = array<i64: 128, 128>}, {pipeline_mode = #tpu.pipeline_mode<synchronous>, transform_indices = @transform_2, window_bounds = array<i64: 128, 1>}, {pipeline_mode = #tpu.pipeline_mode<synchronous>, transform_indices = @transform_3, window_bounds = array<i64: 128, 128>}, {pipeline_mode = #tpu.pipeline_mode<synchronous>, transform_indices = @transform_4, window_bounds = array<i64: 128, 128>}, {pipeline_mode = #tpu.pipeline_mode<synchronous>, transform_indices = @transform_5, window_bounds = array<i64: 128, 128>}]} {
    %c0 = arith.constant 0 : index
    %c0_0 = arith.constant 0 : index
    %0 = vector.load %arg3[%c0, %c0_0] : memref<128x1xf32, #tpu.memory_space<vmem>>, vector<128x1xf32>
    %c0_1 = arith.constant 0 : index
    %c0_2 = arith.constant 0 : index
    %1 = vector.load %arg2[%c0_1, %c0_2] : memref<128x128xf32, #tpu.memory_space<vmem>>, vector<128x128xf32>
    %c0_3 = arith.constant 0 : index
    %c0_4 = arith.constant 0 : index
    %2 = vector.load %arg8[%c0_3, %c0_4] : memref<128x128xf32, #tpu.memory_space<vmem>>, vector<128x128xf32>
    tpu.vector_store %arg8[%c0_3, %c0_4], %1 {strides = array<i32>} : memref<128x128xf32, #tpu.memory_space<vmem>>, vector<128x128xf32>,
    %3 = vector.broadcast %0 : vector<128x1xf32> to vector<128x128xf32>
    %4 = arith.mulf %3, %1 : vector<128x128xf32>
    %5 = arith.truncf %4 : vector<128x128xf32> to vector<128x128xbf16>
    %c0_5 = arith.constant 0 : index
    %c0_6 = arith.constant 0 : index
    %6 = vector.load %arg7[%c0_5, %c0_6] : memref<128x128xbf16, #tpu.memory_space<vmem>>, vector<128x128xbf16>
    tpu.vector_store %arg7[%c0_5, %c0_6], %5 {strides = array<i32>} : memref<128x128xbf16, #tpu.memory_space<vmem>>, vector<128x128xbf16>,
    %c0_7 = arith.constant 0 : index
    %c0_8 = arith.constant 0 : index
    %7 = vector.load %arg1[%c0_7, %c0_8] : memref<128x128xbf16, #tpu.memory_space<vmem>>, vector<128x128xbf16>
    %c0_9 = arith.constant 0 : index
    %c0_10 = arith.constant 0 : index
    %8 = vector.load %arg7[%c0_9, %c0_10] : memref<128x128xbf16, #tpu.memory_space<vmem>>, vector<128x128xbf16>
    %cst = arith.constant dense<0.000000e+00> : vector<128x128xf32>
    %9 = tpu.matmul %7, %8, %cst {dimension_numbers = #tpu.dot_dimension_numbers<[0], [0], [1], [1], [0, 1, 1, 1], [], []>} : vector<128x128xbf16>, vector<128x128xbf16>, vector<128x128xf32> -> vector<128x128xf32>
    %c0_11 = arith.constant 0 : index
    %c0_12 = arith.constant 0 : index
    %10 = vector.load %arg8[%c0_11, %c0_12] : memref<128x128xf32, #tpu.memory_space<vmem>>, vector<128x128xf32>
    %11 = vector.broadcast %0 : vector<128x1xf32> to vector<128x128xf32>
    %12 = arith.mulf %11, %9 : vector<128x128xf32>
    %13 = arith.addf %10, %12 : vector<128x128xf32>
    %c0_13 = arith.constant 0 : index
    %c0_14 = arith.constant 0 : index
    %14 = vector.load %arg8[%c0_13, %c0_14] : memref<128x128xf32, #tpu.memory_space<vmem>>, vector<128x128xf32>
    tpu.vector_store %arg8[%c0_13, %c0_14], %13 {strides = array<i32>} : memref<128x128xf32, #tpu.memory_space<vmem>>, vector<128x128xf32>,
    %15 = arith.mulf %0, %0 : vector<128x1xf32>
    %16 = vector.broadcast %15 : vector<128x1xf32> to vector<128x128xf32>
    %17 = arith.mulf %16, %9 : vector<128x128xf32>
    %18 = arith.truncf %17 : vector<128x128xf32> to vector<128x128xbf16>
    %c0_15 = arith.constant 0 : index
    %c0_16 = arith.constant 0 : index
    %19 = vector.load %arg7[%c0_15, %c0_16] : memref<128x128xbf16, #tpu.memory_space<vmem>>, vector<128x128xbf16>
    tpu.vector_store %arg7[%c0_15, %c0_16], %18 {strides = array<i32>} : memref<128x128xbf16, #tpu.memory_space<vmem>>, vector<128x128xbf16>,
    %c0_17 = arith.constant 0 : index
    %c0_18 = arith.constant 0 : index
    %20 = vector.load %arg1[%c0_17, %c0_18] : memref<128x128xbf16, #tpu.memory_space<vmem>>, vector<128x128xbf16>
    %c0_19 = arith.constant 0 : index
    %c0_20 = arith.constant 0 : index
    %21 = vector.load %arg7[%c0_19, %c0_20] : memref<128x128xbf16, #tpu.memory_space<vmem>>, vector<128x128xbf16>
    %cst_21 = arith.constant dense<0.000000e+00> : vector<128x128xf32>
    %22 = tpu.matmul %20, %21, %cst_21 {dimension_numbers = #tpu.dot_dimension_numbers<[0], [0], [1], [1], [0, 1, 1, 1], [], []>} : vector<128x128xbf16>, vector<128x128xbf16>, vector<128x128xf32> -> vector<128x128xf32>
    %c0_22 = arith.constant 0 : index
    %c0_23 = arith.constant 0 : index
    %23 = vector.load %arg8[%c0_22, %c0_23] : memref<128x128xf32, #tpu.memory_space<vmem>>, vector<128x128xf32>
    %24 = vector.broadcast %0 : vector<128x1xf32> to vector<128x128xf32>
    %25 = arith.mulf %24, %22 : vector<128x128xf32>
    %26 = arith.addf %23, %25 : vector<128x128xf32>
    %c0_24 = arith.constant 0 : index
    %c0_25 = arith.constant 0 : index
    %27 = vector.load %arg8[%c0_24, %c0_25] : memref<128x128xf32, #tpu.memory_space<vmem>>, vector<128x128xf32>
    tpu.vector_store %arg8[%c0_24, %c0_25], %26 {strides = array<i32>} : memref<128x128xf32, #tpu.memory_space<vmem>>, vector<128x128xf32>,
    %28 = arith.mulf %0, %0 : vector<128x1xf32>
    %29 = vector.broadcast %28 : vector<128x1xf32> to vector<128x128xf32>
    %30 = arith.mulf %29, %22 : vector<128x128xf32>
    %31 = arith.truncf %30 : vector<128x128xf32> to vector<128x128xbf16>
    %c0_26 = arith.constant 0 : index
    %c0_27 = arith.constant 0 : index
    %32 = vector.load %arg7[%c0_26, %c0_27] : memref<128x128xbf16, #tpu.memory_space<vmem>>, vector<128x128xbf16>
    tpu.vector_store %arg7[%c0_26, %c0_27], %31 {strides = array<i32>} : memref<128x128xbf16, #tpu.memory_space<vmem>>, vector<128x128xbf16>,
    %c0_28 = arith.constant 0 : index
    %c0_29 = arith.constant 0 : index
    %33 = vector.load %arg1[%c0_28, %c0_29] : memref<128x128xbf16, #tpu.memory_space<vmem>>, vector<128x128xbf16>
    %c0_30 = arith.constant 0 : index
    %c0_31 = arith.constant 0 : index
    %34 = vector.load %arg7[%c0_30, %c0_31] : memref<128x128xbf16, #tpu.memory_space<vmem>>, vector<128x128xbf16>
    %cst_32 = arith.constant dense<0.000000e+00> : vector<128x128xf32>
    %35 = tpu.matmul %33, %34, %cst_32 {dimension_numbers = #tpu.dot_dimension_numbers<[0], [0], [1], [1], [0, 1, 1, 1], [], []>} : vector<128x128xbf16>, vector<128x128xbf16>, vector<128x128xf32> -> vector<128x128xf32>
    %c0_33 = arith.constant 0 : index
    %c0_34 = arith.constant 0 : index
    %36 = vector.load %arg8[%c0_33, %c0_34] : memref<128x128xf32, #tpu.memory_space<vmem>>, vector<128x128xf32>
    %37 = vector.broadcast %0 : vector<128x1xf32> to vector<128x128xf32>
    %38 = arith.mulf %37, %35 : vector<128x128xf32>
    %39 = arith.addf %36, %38 : vector<128x128xf32>
    %c0_35 = arith.constant 0 : index
    %c0_36 = arith.constant 0 : index
    %40 = vector.load %arg8[%c0_35, %c0_36] : memref<128x128xf32, #tpu.memory_space<vmem>>, vector<128x128xf32>
    tpu.vector_store %arg8[%c0_35, %c0_36], %39 {strides = array<i32>} : memref<128x128xf32, #tpu.memory_space<vmem>>, vector<128x128xf32>,
    %41 = arith.mulf %0, %0 : vector<128x1xf32>
    %42 = vector.broadcast %41 : vector<128x1xf32> to vector<128x128xf32>
    %43 = arith.mulf %42, %35 : vector<128x128xf32>
    %44 = arith.truncf %43 : vector<128x128xf32> to vector<128x128xbf16>
    %c0_37 = arith.constant 0 : index
    %c0_38 = arith.constant 0 : index
    %45 = vector.load %arg7[%c0_37, %c0_38] : memref<128x128xbf16, #tpu.memory_space<vmem>>, vector<128x128xbf16>
    tpu.vector_store %arg7[%c0_37, %c0_38], %44 {strides = array<i32>} : memref<128x128xbf16, #tpu.memory_space<vmem>>, vector<128x128xbf16>,
    %c0_39 = arith.constant 0 : index
    %c0_40 = arith.constant 0 : index
    %46 = vector.load %arg1[%c0_39, %c0_40] : memref<128x128xbf16, #tpu.memory_space<vmem>>, vector<128x128xbf16>
    %c0_41 = arith.constant 0 : index
    %c0_42 = arith.constant 0 : index
    %47 = vector.load %arg7[%c0_41, %c0_42] : memref<128x128xbf16, #tpu.memory_space<vmem>>, vector<128x128xbf16>
    %cst_43 = arith.constant dense<0.000000e+00> : vector<128x128xf32>
    %48 = tpu.matmul %46, %47, %cst_43 {dimension_numbers = #tpu.dot_dimension_numbers<[0], [0], [1], [1], [0, 1, 1, 1], [], []>} : vector<128x128xbf16>, vector<128x128xbf16>, vector<128x128xf32> -> vector<128x128xf32>
    %c0_44 = arith.constant 0 : index
    %c0_45 = arith.constant 0 : index
    %49 = vector.load %arg8[%c0_44, %c0_45] : memref<128x128xf32, #tpu.memory_space<vmem>>, vector<128x128xf32>
    %50 = vector.broadcast %0 : vector<128x1xf32> to vector<128x128xf32>
    %51 = arith.mulf %50, %48 : vector<128x128xf32>
    %52 = arith.addf %49, %51 : vector<128x128xf32>
    %c0_46 = arith.constant 0 : index
    %c0_47 = arith.constant 0 : index
    %53 = vector.load %arg8[%c0_46, %c0_47] : memref<128x128xf32, #tpu.memory_space<vmem>>, vector<128x128xf32>
    tpu.vector_store %arg8[%c0_46, %c0_47], %52 {strides = array<i32>} : memref<128x128xf32, #tpu.memory_space<vmem>>, vector<128x128xf32>,
    %54 = arith.mulf %0, %0 : vector<128x1xf32>
    %55 = vector.broadcast %54 : vector<128x1xf32> to vector<128x128xf32>
    %56 = arith.mulf %55, %48 : vector<128x128xf32>
    %57 = arith.truncf %56 : vector<128x128xf32> to vector<128x128xbf16>
    %c0_48 = arith.constant 0 : index
    %c0_49 = arith.constant 0 : index
    %58 = vector.load %arg7[%c0_48, %c0_49] : memref<128x128xbf16, #tpu.memory_space<vmem>>, vector<128x128xbf16>
    tpu.vector_store %arg7[%c0_48, %c0_49], %57 {strides = array<i32>} : memref<128x128xbf16, #tpu.memory_space<vmem>>, vector<128x128xbf16>,
    %c0_50 = arith.constant 0 : index
    %c0_51 = arith.constant 0 : index
    %59 = vector.load %arg8[%c0_50, %c0_51] : memref<128x128xf32, #tpu.memory_space<vmem>>, vector<128x128xf32>
    %60 = arith.truncf %59 : vector<128x128xf32> to vector<128x128xbf16>
    %c0_52 = arith.constant 0 : index
    %c0_53 = arith.constant 0 : index
    %61 = vector.load %arg4[%c0_52, %c0_53] : memref<128x128xbf16, #tpu.memory_space<vmem>>, vector<128x128xbf16>
    %cst_54 = arith.constant dense<0.000000e+00> : vector<128x128xf32>
    %62 = tpu.matmul %60, %61, %cst_54 {dimension_numbers = #tpu.dot_dimension_numbers<[1], [0], [0], [1], [0, 0, 1, 1], [], []>} : vector<128x128xbf16>, vector<128x128xbf16>, vector<128x128xf32> -> vector<128x128xf32>
    %cst_55 = arith.constant 0.000000e+00 : f32
    %63 = vector.broadcast %cst_55 : f32 to vector<128x128xf32>
    %64 = arith.maximumf %62, %63 : vector<128x128xf32>
    %65 = arith.truncf %64 : vector<128x128xf32> to vector<128x128xbf16>
    %c0_56 = arith.constant 0 : index
    %c0_57 = arith.constant 0 : index
    %66 = vector.load %arg5[%c0_56, %c0_57] : memref<128x128xbf16, #tpu.memory_space<vmem>>, vector<128x128xbf16>
    %cst_58 = arith.constant dense<0.000000e+00> : vector<128x128xf32>
    %67 = tpu.matmul %65, %66, %cst_58 {dimension_numbers = #tpu.dot_dimension_numbers<[1], [0], [0], [1], [0, 0, 1, 1], [], []>} : vector<128x128xbf16>, vector<128x128xbf16>, vector<128x128xf32> -> vector<128x128xf32>
    %c0_59 = arith.constant 0 : index
    %c0_60 = arith.constant 0 : index
    %68 = vector.load %arg6[%c0_59, %c0_60] : memref<128x128xf32, #tpu.memory_space<vmem>>, vector<128x128xf32>
    tpu.vector_store %arg6[%c0_59, %c0_60], %67 {strides = array<i32>} : memref<128x128xf32, #tpu.memory_space<vmem>>, vector<128x128xf32>,
    return
  }
  func.func @transform_0(%arg0: i32) -> (i32, i32) {
    %c0_i32 = arith.constant 0 : i32
    %c0_i32_0 = arith.constant 0 : i32
    %c0_i32_1 = arith.constant 0 : i32
    return %c0_i32, %c0_i32_0 : i32, i32
  }
  func.func @transform_1(%arg0: i32) -> (i32, i32) {
    %c0_i32 = arith.constant 0 : i32
    %c0_i32_0 = arith.constant 0 : i32
    %c0_i32_1 = arith.constant 0 : i32
    return %c0_i32, %c0_i32_0 : i32, i32
  }
  func.func @transform_2(%arg0: i32) -> (i32, i32) {
    %c0_i32 = arith.constant 0 : i32
    %c0_i32_0 = arith.constant 0 : i32
    %c0_i32_1 = arith.constant 0 : i32
    return %c0_i32, %c0_i32_0 : i32, i32
  }
  func.func @transform_3(%arg0: i32) -> (i32, i32) {
    %c0_i32 = arith.constant 0 : i32
    %c0_i32_0 = arith.constant 0 : i32
    %c0_i32_1 = arith.constant 0 : i32
    return %c0_i32, %c0_i32_0 : i32, i32
  }
  func.func @transform_4(%arg0: i32) -> (i32, i32) {
    %c0_i32 = arith.constant 0 : i32
    %c0_i32_0 = arith.constant 0 : i32
    %c0_i32_1 = arith.constant 0 : i32
    return %c0_i32, %c0_i32_0 : i32, i32
  }
  func.func @transform_5(%arg0: i32) -> (i32, i32) {
    %c0_i32 = arith.constant 0 : i32
    %c0_i32_0 = arith.constant 0 : i32
    %c0_i32_1 = arith.constant 0 : i32
    return %c0_i32, %c0_i32_0 : i32, i32
  }
}

</mosaic_0001>

<bundles_post_ra>
// kernel: tpu_custom_call.1
= control target key start
LH: loop header
LB: loop body
LE: loop exit
PB: predicated region body
PF: predicated region fallthrough
CT: control target
= control target key end

     0   :  { %10 = vsyncpa [#allocation5], 0  ;;  %s2951_s0 = inlined_call_operand.hbm [shape: bf16[128,128], index: 0, kind: input, shape index: {}]   ;;  %s2952_s1 = inlined_call_operand.vmem [shape: f32[128,128], index: 1, kind: input, shape index: {}]   ;;  %s2953_s2 = inlined_call_operand.vmem [shape: f32[128,1], index: 2, kind: input, shape index: {}]   ;;  %s2954_s3 = inlined_call_operand.hbm [shape: bf16[128,128], index: 3, kind: input, shape index: {}]   ;;  %s2955_s4 = inlined_call_operand.hbm [shape: bf16[128,128], index: 4, kind: input, shape index: {}]   ;;  %s2956_s5 = inlined_call_operand.hbm [shape: f32[128,128], index: 5, kind: output, shape index: {}]  }
   0x1   :  { %11 = vsyncpa [#allocation8], 0 }
   0x2   :  { %12 = vsyncpa [#allocation6], 0  ;;  %s2336_s18 = smov [#allocation7]   ;;  %s2337_s20 = smov [#allocation4]  }
   0x3   :  { %s34_s19 = sshll.u32 %s2336_s18, 4  ;;  %s18_s21 = sshll.u32 %s2337_s20, 4  ;;  %s35_s19 = int_to_ptr.vmem [resolvable:$true] %s34_s19  ;;  %s2375_s21 = int_to_ptr.vmem [resolvable:$true] %s18_s21 }
   0x4   :  { %s2242_s24 = scalar_lea.hbm %s2954_s3, 1024 }
   0x5   :  { %p2243_p0 = scmp.ne.s32.totalorder %s2954_s3, %s2242_s24  ;;  %p2246_p1 = scmp.lt.u32.totalorder %s2242_s24, %s2954_s3 }
   0x7   :  { %p2248_p2 = pnand %p2246_p1, %p2243_p0 }
   0x9   :  { %2251 = shalt.err (!%p2248_p2)
}
   0xa   :  { %s2252_s29 = scalar_lea.vmem %s35_s19, 1024  ;;  %p2257_p4 = scmp.lt.s32.totalorder %s35_s19, %s35_s19 }
   0xb   :  { %p2253_p3 = scmp.ne.s32.totalorder %s35_s19, %s2252_s29  ;;  %p2258_p5 = scmp.lt.s32.totalorder %s2252_s29, %s2252_s29 }
   0xd   :  { %p2259_p6 = por %p2258_p5, %p2257_p4 }
   0xf   :  { %p2260_p7 = pnand %p2259_p6, %p2253_p3 }
  0x11   :  { %2263 = shalt.err (!%p2260_p7)
}
  0x12   :  { %s2338_s30 = smov 64   ;;  %s2339_s6 = smov 4  }
  0x13   :  { %40 = dma.hbm_to_vmem [thread:$0]  %s2954_s3, 1024, %s35_s19, [#allocation8], %s2338_s30, %s2338_s30, %s2339_s6  }
  0x14   :  { %s2264_s11 = scalar_lea.hbm %s2951_s0, 1024 }
  0x15   :  { %p2265_p8 = scmp.ne.s32.totalorder %s2951_s0, %s2264_s11  ;;  %p2268_p9 = scmp.lt.u32.totalorder %s2264_s11, %s2951_s0 }
  0x17   :  { %p2270_p10 = pnand %p2268_p9, %p2265_p8 }
  0x19   :  { %2273 = shalt.err (!%p2270_p10)
}
  0x1a   :  { %s2274_s16 = scalar_lea.vmem %s2375_s21, 1024  ;;  %p2279_p12 = scmp.lt.s32.totalorder %s2375_s21, %s2375_s21 }
  0x1b   :  { %p2275_p11 = scmp.ne.s32.totalorder %s2375_s21, %s2274_s16  ;;  %p2280_p13 = scmp.lt.s32.totalorder %s2274_s16, %s2274_s16 }
  0x1d   :  { %p2281_p0 = por %p2280_p13, %p2279_p12 }
  0x1f   :  { %p2282_p1 = pnand %p2281_p0, %p2275_p11 }
  0x21   :  { %2285 = shalt.err (!%p2282_p1)
}
  0x22   :  { %24 = dma.hbm_to_vmem [thread:$0]  %s2951_s0, 1024, %s2375_s21, [#allocation5], %s2338_s30, %s2338_s30, %s2339_s6  }
  0x23   :  { %s2340_s18 = smov [#allocation9]   ;;  %s2286_s23 = scalar_lea.hbm %s2955_s4, 1024 }
  0x24   :  { %s46_s19 = sshll.u32 %s2340_s18, 4  ;;  %p2287_p2 = scmp.ne.s32.totalorder %s2955_s4, %s2286_s23  ;;  %s47_s19 = int_to_ptr.vmem [resolvable:$true] %s46_s19 }
  0x25   :  { %p2290_p3 = scmp.lt.u32.totalorder %s2286_s23, %s2955_s4 }
  0x27   :  { %p2292_p4 = pnand %p2290_p3, %p2287_p2 }
  0x29   :  { %2295 = shalt.err (!%p2292_p4)
}
  0x2a   :  { %s2296_s28 = scalar_lea.vmem %s47_s19, 1024  ;;  %p2301_p6 = scmp.lt.s32.totalorder %s47_s19, %s47_s19 }
  0x2b   :  { %p2297_p5 = scmp.ne.s32.totalorder %s47_s19, %s2296_s28  ;;  %p2302_p7 = scmp.lt.s32.totalorder %s2296_s28, %s2296_s28 }
  0x2d   :  { %p2303_p8 = por %p2302_p7, %p2301_p6 }
  0x2f   :  { %p2304_p9 = pnand %p2303_p8, %p2297_p5 }
  0x31   :  { %2307 = shalt.err (!%p2304_p9)
}
  0x32   :  { %52 = dma.hbm_to_vmem [thread:$0]  %s2955_s4, 1024, %s47_s19, [#allocation8], %s2338_s30, %s2338_s30, %s2339_s6  }
  0x33   :  { %2330 = dma.done.wait [#allocation5], 1024  }
  0x34   :  { %2331 = vsyncadd [#allocation5], 4294966272 }
  0x35   :  { %2332 = dma.done.wait [#allocation8], 2048  }
  0x36   :  { %2333 = vsyncadd [#allocation8], 4294965248  ;;  %v2341_v0 = vmov 0   ;;  %v65_v1 = vld [vmem:[%s2953_s2 + $0x10] sm:$0xff]  ;;  %v63_v2 = vld [vmem:[%s2953_s2] sm:$0xff] }
  0x37   :  { %2193 = vset.pattern.permute.xlu1 %v2341_v0  ;;  %2192 = vset.pattern.permute.xlu0 %v2341_v0  ;;  %v66_v3 = vld [vmem:[%s2953_s2 + $0x18] sm:$0xff]  ;;  %v64_v4 = vld [vmem:[%s2953_s2 + $0x8] sm:$0xff]  ;;  %v67_v6 = vld [vmem:[%s2953_s2 + $0x20] sm:$0xff]  ;;  %v472_v17 = vmul.f32 %v63_v2, %v63_v2  ;;  %v474_v19 = vmul.f32 %v65_v1, %v65_v1 }
  0x38   :  { %123 = vperm.xlu1 %2193, %v65_v1   ;;  %113 = vperm.xlu0 %2192, %v63_v2   ;;  %v68_v5 = vld [vmem:[%s2953_s2 + $0x28] sm:$0xff]  ;;  %v70_v7 = vld [vmem:[%s2953_s2 + $0x38] sm:$0xff]  ;;  %v69_v8 = vld [vmem:[%s2953_s2 + $0x30] sm:$0xff]  ;;  %v473_v18 = vmul.f32 %v64_v4, %v64_v4  ;;  %v475_v20 = vmul.f32 %v66_v3, %v66_v3  ;;  %v476_v21 = vmul.f32 %v67_v6, %v67_v6 }
  0x39   :  { %v72_v9 = vld [vmem:[%s2953_s2 + $0x48] sm:$0xff]  ;;  %v71_v10 = vld [vmem:[%s2953_s2 + $0x40] sm:$0xff]  ;;  %v74_v11 = vld [vmem:[%s2953_s2 + $0x58] sm:$0xff]  ;;  %v477_v22 = vmul.f32 %v68_v5, %v68_v5  ;;  %v478_v23 = vmul.f32 %v69_v8, %v69_v8  ;;  %v479_v25 = vmul.f32 %v70_v7, %v70_v7 }
  0x3a   :  { %v73_v12 = vld [vmem:[%s2953_s2 + $0x50] sm:$0xff]  ;;  %v76_v13 = vld [vmem:[%s2953_s2 + $0x68] sm:$0xff]  ;;  %v75_v14 = vld [vmem:[%s2953_s2 + $0x60] sm:$0xff]  ;;  %v480_v27 = vmul.f32 %v71_v10, %v71_v10  ;;  %v481_v29 = vmul.f32 %v72_v9, %v72_v9  ;;  %v483_v33 = vmul.f32 %v74_v11, %v74_v11 }
  0x3b   :  { %v78_v15 = vld [vmem:[%s2953_s2 + $0x78] sm:$0xff]  ;;  %v77_v16 = vld [vmem:[%s2953_s2 + $0x70] sm:$0xff]  ;;  %v2194_v24 = vld [vmem:[#allocation4] sm:$0xff]   ;;  %v482_v31 = vmul.f32 %v73_v12, %v73_v12  ;;  %v484_v35 = vmul.f32 %v75_v14, %v75_v14  ;;  %v485_v37 = vmul.f32 %v76_v13, %v76_v13 }
  0x3c   :  { %128 = vperm.xlu1 %2193, %v66_v3   ;;  %118 = vperm.xlu0 %2192, %v64_v4   ;;  %v2195_v26 = vld [vmem:[#allocation4 + $0x8] sm:$0xff]   ;;  %v2196_v28 = vld [vmem:[#allocation4 + $0x10] sm:$0xff]   ;;  %v2197_v30 = vld [vmem:[#allocation4 + $0x18] sm:$0xff]   ;;  %v486_v39 = vmul.f32 %v77_v16, %v77_v16  ;;  %v487_v40 = vmul.f32 %v78_v15, %v78_v15 }
  0x3d   :  { %v2198_v32 = vld [vmem:[#allocation4 + $0x20] sm:$0xff]   ;;  %v2199_v34 = vld [vmem:[#allocation4 + $0x28] sm:$0xff]   ;;  %v2200_v36 = vld [vmem:[#allocation4 + $0x30] sm:$0xff]  }
  0x3e   :  { %v2201_v38 = vld [vmem:[#allocation4 + $0x38] sm:$0xff]   ;;  %v2202_v41 = vld [vmem:[#allocation4] sm:$0xff]   ;;  %v2203_v42 = vld [vmem:[#allocation4 + $0x8] sm:$0xff]  }
  0x3f   :  { %v2204_v45 = vld [vmem:[#allocation4 + $0x10] sm:$0xff]   ;;  %v2482_v46 = vld [vmem:[%s2952_s1] sm:$0xff]  ;;  %v2487_v47 = vld [vmem:[%s2952_s1 + $0x8] sm:$0xff] }
  0x40   :  { %138 = vperm.xlu1 %2193, %v68_v5   ;;  %133 = vperm.xlu0 %2192, %v67_v6   ;;  %v2492_v48 = vld [vmem:[%s2952_s1 + $0x10] sm:$0xff]  ;;  %v2497_v49 = vld [vmem:[%s2952_s1 + $0x18] sm:$0xff]  ;;  %v2514_v57 = vld [vmem:[%s2952_s1 + $0x20] sm:$0xff] }
  0x41   :  { %v2205_v52 = vld [vmem:[#allocation4 + $0x18] sm:$0xff]   ;;  %v2519_v58 = vld [vmem:[%s2952_s1 + $0x28] sm:$0xff]  ;;  %v2206_v62 = vld [vmem:[#allocation4 + $0x20] sm:$0xff]  }
  0x42   :  { %v2532_v2 = vld [vmem:[%s2952_s1 + $0x30] sm:$0xff]  ;;  %v2537_v3 = vld [vmem:[%s2952_s1 + $0x38] sm:$0xff]  ;;  %v2207_v6 = vld [vmem:[#allocation4 + $0x28] sm:$0xff]  }
  0x44   :  { %148 = vperm.xlu1 %2193, %v70_v7   ;;  %143 = vperm.xlu0 %2192, %v69_v8  }
  0x48   :  { %158 = vperm.xlu1 %2193, %v72_v9   ;;  %153 = vperm.xlu0 %2192, %v71_v10   ;;  %v2550_v10 = vld [vmem:[%s2952_s1 + $0x40] sm:$0xff] }
  0x4c   :  { %168 = vperm.xlu1 %2193, %v74_v11   ;;  %163 = vperm.xlu0 %2192, %v73_v12   ;;  %v2555_v11 = vld [vmem:[%s2952_s1 + $0x48] sm:$0xff] }
  0x50   :  { %178 = vperm.xlu1 %2193, %v76_v13   ;;  %173 = vperm.xlu0 %2192, %v75_v14   ;;  %v2208_v14 = vld [vmem:[#allocation4 + $0x30] sm:$0xff]  }
  0x54   :  { %188 = vperm.xlu1 %2193, %v78_v15   ;;  %183 = vperm.xlu0 %2192, %v77_v16  }
  0x58   :  { %490 = vperm.xlu1 %2193, %v472_v17  }
  0x5c   :  { %495 = vperm.xlu1 %2193, %v473_v18   ;;  %v2568_v18 = vld [vmem:[%s2952_s1 + $0x50] sm:$0xff] }
  0x60   :  { %500 = vperm.xlu1 %2193, %v474_v19   ;;  %v2573_v19 = vld [vmem:[%s2952_s1 + $0x58] sm:$0xff] }
  0x64   :  { %505 = vperm.xlu1 %2193, %v475_v20  }
  0x68   :  { %510 = vperm.xlu1 %2193, %v476_v21  }
  0x6c   :  { %515 = vperm.xlu1 %2193, %v477_v22   ;;  %v2209_v22 = vld [vmem:[#allocation4 + $0x38] sm:$0xff]  }
  0x70   :  { %520 = vperm.xlu1 %2193, %v478_v23  }
  0x72   :  { %295 = vxpose.xlu0.c.b16.start [1/8] %v2194_v24, 128 }
  0x74   :  { %525 = vperm.xlu1 %2193, %v479_v25  }
  0x76   :  { %296 = vxpose.xlu0.c.b16.cont [2/8] %v2195_v26, 128  ;;  %v2586_v26 = vld [vmem:[%s2952_s1 + $0x60] sm:$0xff] }
  0x77   :  { %2981 = vst [vmem:[#allocation14_spill] sm:$0xff] %v2586_v26 }
  0x78   :  { %530 = vperm.xlu1 %2193, %v480_v27   ;;  %v2591_v27 = vld [vmem:[%s2952_s1 + $0x68] sm:$0xff] }
  0x79   :  { %2982 = vst [vmem:[#allocation15_spill] sm:$0xff] %v2591_v27 }
  0x7a   :  { %297 = vxpose.xlu0.c.b16.cont [3/8] %v2196_v28, 128 }
  0x7c   :  { %535 = vperm.xlu1 %2193, %v481_v29  }
  0x7e   :  { %298 = vxpose.xlu0.c.b16.cont [4/8] %v2197_v30, 128 }
  0x80   :  { %540 = vperm.xlu1 %2193, %v482_v31  }
  0x82   :  { %299 = vxpose.xlu0.c.b16.cont [5/8] %v2198_v32, 128 }
  0x84   :  { %545 = vperm.xlu1 %2193, %v483_v33   ;;  %v2604_v33 = vld [vmem:[%s2952_s1 + $0x70] sm:$0xff] }
  0x85   :  { %2985 = vst [vmem:[#allocation18_spill] sm:$0xff] %v2604_v33 }
  0x86   :  { %300 = vxpose.xlu0.c.b16.cont [6/8] %v2199_v34, 128  ;;  %v2609_v34 = vld [vmem:[%s2952_s1 + $0x78] sm:$0xff]  ;;  %s2342_s1 = smov [#allocation10]  }
  0x87   :  { %2986 = vst [vmem:[#allocation19_spill] sm:$0xff] %v2609_v34  ;;  %s1834_s4 = sshll.u32 %s2342_s1, 4  ;;  %s1835_s4 = int_to_ptr.vmem [resolvable:$true] %s1834_s4 }
  0x88   :  { %550 = vperm.xlu1 %2193, %v484_v35   ;;  %s2308_s30 = scalar_lea.vmem %s1835_s4, 2048  ;;  %p2313_p11 = scmp.lt.s32.totalorder %s1835_s4, %s1835_s4 }
  0x89   :  { %p2309_p10 = scmp.ne.s32.totalorder %s1835_s4, %s2308_s30  ;;  %p2314_p12 = scmp.lt.s32.totalorder %s2308_s30, %s2308_s30 }
  0x8a   :  { %301 = vxpose.xlu0.c.b16.cont [7/8] %v2200_v36, 128 }
  0x8b   :  { %p2315_p13 = por %p2314_p12, %p2313_p11 }
  0x8c   :  { %555 = vperm.xlu1 %2193, %v485_v37  }
  0x8d   :  { %p2316_p0 = pnand %p2315_p13, %p2309_p10 }
  0x8e   :  { %302 = vxpose.xlu0.c.b16.end [8/8] %v2201_v38, 128 }
  0x90   :  { %560 = vperm.xlu1 %2193, %v486_v39  }
  0x97   :  { %565 = vperm.xlu0 %2192, %v487_v40  }
  0xb3   :  { %672 = vxpose.xlu1.c.b16.start [1/8] %v2202_v41, 128 }
  0xb7   :  { %v2475_v43 = vpop.permute.xlu1 %123  ;;  %v2477_v44 = vpop.permute.xlu0 %113  ;;  %673 = vxpose.xlu1.c.b16.cont [2/8] %v2203_v42, 128 }
  0xb8   :  { %v191_v53 = vmul.f32 %v2477_v44, %v2482_v46  ;;  %v193_v55 = vmul.f32 %v2475_v43, %v2492_v48 }
  0xbb   :  { %v2499_v50 = vpop.permute.xlu1 %128  ;;  %v2501_v51 = vpop.permute.xlu0 %118  ;;  %674 = vxpose.xlu1.c.b16.cont [3/8] %v2204_v45, 128 }
  0xbc   :  { %v192_v54 = vmul.f32 %v2501_v51, %v2487_v47  ;;  %v194_v56 = vmul.f32 %v2499_v50, %v2497_v49 }
  0xbe   :  { %v207_v59 = vpack.c.bf16 %v192_v54, %v191_v53  ;;  %v208_v63 = vpack.c.bf16 %v194_v56, %v193_v55 }
  0xbf   :  { %v2521_v60 = vpop.permute.xlu1 %138  ;;  %v2523_v61 = vpop.permute.xlu0 %133  ;;  %675 = vxpose.xlu1.c.b16.cont [4/8] %v2205_v52, 128 }
  0xc0   :  { %1991 = vmatprep.subr.bf16.mxu0 %v207_v59  ;;  %v195_v0 = vmul.f32 %v2523_v61, %v2514_v57  ;;  %v196_v1 = vmul.f32 %v2521_v60, %v2519_v58 }
  0xc1   :  { %1992 = vmatpush3.bf16.msra.mxu0 %v207_v59 }
  0xc2   :  { %1993 = vmatprep.subr.bf16.mxu0 %v208_v63  ;;  %v209_v7 = vpack.c.bf16 %v196_v1, %v195_v0 }
  0xc3   :  { %v2539_v4 = vpop.permute.xlu1 %148  ;;  %v2541_v5 = vpop.permute.xlu0 %143  ;;  %676 = vxpose.xlu1.c.b16.cont [5/8] %v2206_v62, 128 }
  0xc4   :  { %v197_v8 = vmul.f32 %v2541_v5, %v2532_v2  ;;  %v198_v9 = vmul.f32 %v2539_v4, %v2537_v3 }
  0xc5   :  { %1994 = vmatpush3.bf16.msra.mxu0 %v208_v63 }
  0xc6   :  { %1995 = vmatprep.subr.bf16.mxu0 %v209_v7  ;;  %v210_v15 = vpack.c.bf16 %v198_v9, %v197_v8 }
  0xc7   :  { %v2557_v12 = vpop.permute.xlu1 %158  ;;  %v2559_v13 = vpop.permute.xlu0 %153  ;;  %677 = vxpose.xlu1.c.b16.cont [6/8] %v2207_v6, 128 }
  0xc8   :  { %v199_v16 = vmul.f32 %v2559_v13, %v2550_v10  ;;  %v200_v17 = vmul.f32 %v2557_v12, %v2555_v11 }
  0xc9   :  { %1996 = vmatpush3.bf16.msra.mxu0 %v209_v7 }
  0xca   :  { %1997 = vmatprep.subr.bf16.mxu0 %v210_v15  ;;  %v211_v23 = vpack.c.bf16 %v200_v17, %v199_v16 }
  0xcb   :  { %v2575_v20 = vpop.permute.xlu1 %168  ;;  %v2577_v21 = vpop.permute.xlu0 %163  ;;  %678 = vxpose.xlu1.c.b16.cont [7/8] %v2208_v14, 128 }
  0xcc   :  { %v201_v24 = vmul.f32 %v2577_v21, %v2568_v18  ;;  %v202_v25 = vmul.f32 %v2575_v20, %v2573_v19 }
  0xcd   :  { %1998 = vmatpush3.bf16.msra.mxu0 %v210_v15 }
  0xce   :  { %1999 = vmatprep.subr.bf16.mxu0 %v211_v23  ;;  %v212_v30 = vpack.c.bf16 %v202_v25, %v201_v24  ;;  %v2210_v25 = vld [vmem:[#allocation4] sm:$0xff]  }
  0xcf   :  { %v2593_v28 = vpop.permute.xlu1 %178  ;;  %v2595_v29 = vpop.permute.xlu0 %173  ;;  %679 = vxpose.xlu1.c.b16.end [8/8] %v2209_v22, 128  ;;  %953 = vxpose.xlu0.c.b16.start [1/8] %v2210_v25, 128 }
  0xd0   :  { %2983 = vst [vmem:[#allocation16_spill] sm:$0xff] %v2593_v28  ;;  %2984 = vst [vmem:[#allocation17_spill] sm:$0xff] %v2595_v29  ;;  %v203_v31 = vmul.f32 %v2595_v29, %v2586_v26  ;;  %v204_v32 = vmul.f32 %v2593_v28, %v2591_v27 }
  0xd1   :  { %2000 = vmatpush3.bf16.msra.mxu0 %v211_v23 }
  0xd2   :  { %2001 = vmatprep.subr.bf16.mxu0 %v212_v30  ;;  %v213_v37 = vpack.c.bf16 %v204_v32, %v203_v31  ;;  %v2212_v31 = vld [vmem:[#allocation4 + $0x10] sm:$0xff]   ;;  %v2213_v32 = vld [vmem:[#allocation4 + $0x18] sm:$0xff]  }
  0xd3   :  { %v2611_v35 = vpop.permute.xlu1 %188  ;;  %v2613_v36 = vpop.permute.xlu0 %183 }
  0xd4   :  { %2987 = vst [vmem:[#allocation20_spill] sm:$0xff] %v2611_v35  ;;  %2988 = vst [vmem:[#allocation21_spill] sm:$0xff] %v2613_v36  ;;  %v205_v38 = vmul.f32 %v2613_v36, %v2604_v33  ;;  %v206_v39 = vmul.f32 %v2611_v35, %v2609_v34 }
  0xd5   :  { %2002 = vmatpush3.bf16.msra.mxu0 %v212_v30  ;;  %v2211_v30 = vld [vmem:[#allocation4 + $0x8] sm:$0xff]  }
  0xd6   :  { %2003 = vmatprep.subr.bf16.mxu0 %v213_v37  ;;  %v214_v40 = vpack.c.bf16 %v206_v39, %v205_v38  ;;  %954 = vxpose.xlu0.c.b16.cont [2/8] %v2211_v30, 128  ;;  %v2215_v38 = vld [vmem:[#allocation4 + $0x28] sm:$0xff]   ;;  %v2216_v39 = vld [vmem:[#allocation4 + $0x30] sm:$0xff]  }
  0xd7   :  { %v2619_v59 = vpop.permute.xlu1 %490 }
  0xd8   :  { %v303_v41 = vpop.trf.xlu0 }
  0xd9   :  { %2004 = vmatpush3.bf16.msra.mxu0 %v213_v37  ;;  %2007 = vmatprep.mubr.bf16.mxu0 %v303_v41  ;;  %v2214_v37 = vld [vmem:[#allocation4 + $0x20] sm:$0xff]  }
  0xda   :  { %2005 = vmatprep.subr.bf16.mxu0 %v214_v40  ;;  %955 = vxpose.xlu0.c.b16.cont [3/8] %v2212_v31, 128 }
  0xdb   :  { %v2621_v62 = vpop.permute.xlu1 %495 }
  0xdc   :  { %v304_v42 = vpop.trf.xlu0 }
  0xdd   :  { %2006 = vmatpush3.bf16.msra.mxu0 %v214_v40  ;;  %v2217_v40 = vld [vmem:[#allocation4 + $0x38] sm:$0xff]  }
  0xde   :  { %956 = vxpose.xlu0.c.b16.cont [4/8] %v2213_v32, 128 }
  0xdf   :  { %v2623_v63 = vpop.permute.xlu1 %500 }
  0xe0   :  { %2008 = vmatmul.mubr.bf16.vlgmr.msra.gmra.mrb[0].mxu0 %v304_v42  ;;  %v305_v45 = vpop.trf.xlu0 }
  0xe1   :  { %2011 = vmatprep.mubr.bf16.mxu0 %v305_v45 }
  0xe2   :  { %957 = vxpose.xlu0.c.b16.cont [5/8] %v2214_v37, 128 }
  0xe3   :  { %v2625_v0 = vpop.permute.xlu1 %505 }
  0xe4   :  { %v306_v52 = vpop.trf.xlu0 }
  0xe6   :  { %958 = vxpose.xlu0.c.b16.cont [6/8] %v2215_v38, 128 }
  0xe7   :  { %v2627_v1 = vpop.permute.xlu1 %510 }
  0xe8   :  { %2012 = vmatmul.mubr.bf16.gmra.mrb[4].mxu0 %v306_v52  ;;  %v307_v53 = vpop.trf.xlu0 }
  0xe9   :  { %2015 = vmatprep.mubr.bf16.mxu0 %v307_v53 }
  0xea   :  { %959 = vxpose.xlu0.c.b16.cont [7/8] %v2216_v39, 128 }
  0xeb   :  { %v2629_v6 = vpop.permute.xlu1 %515 }
  0xec   :  { %v308_v54 = vpop.trf.xlu0 }
  0xee   :  { %960 = vxpose.xlu0.c.b16.end [8/8] %v2217_v40, 128 }
  0xef   :  { %v2631_v7 = vpop.permute.xlu1 %520 }
  0xf0   :  { %2016 = vmatmul.mubr.bf16.gmra.mrb[8].mxu0 %v308_v54  ;;  %v309_v55 = vpop.trf.xlu0 }
  0xf1   :  { %2019 = vmatprep.mubr.bf16.mxu0 %v309_v55 }
  0xf3   :  { %v2633_v8 = vpop.permute.xlu1 %525 }
  0xf4   :  { %v310_v56 = vpop.trf.xlu0 }
  0xf7   :  { %v2635_v9 = vpop.permute.xlu1 %530 }
  0xf8   :  { %2020 = vmatmul.mubr.bf16.gmra.mrb[12].mxu0 %v310_v56  ;;  %2989 = vst [vmem:[#allocation22_spill] sm:$0xff] %v2635_v9 }
  0xfb   :  { %v2637_v14 = vpop.permute.xlu1 %535 }
  0xfc   :  { %2990 = vst [vmem:[#allocation23_spill] sm:$0xff] %v2637_v14 }
  0xff   :  { %v2639_v15 = vpop.permute.xlu1 %540 }
 0x103   :  { %v2641_v16 = vpop.permute.xlu1 %545 }
 0x107   :  { %v2643_v17 = vpop.permute.xlu1 %550 }
 0x108   :  { %2991 = vst [vmem:[#allocation24_spill] sm:$0xff] %v2643_v17 }
 0x10b   :  { %v2645_v22 = vpop.permute.xlu1 %555 }
 0x10f   :  { %v2647_v23 = vpop.permute.xlu1 %560 }
 0x110   :  { %2992 = vst [vmem:[#allocation25_spill] sm:$0xff] %v2647_v23 }
 0x116   :  { %v2701_v35 = vpop.permute.xlu0 %565 }
 0x117   :  { %2993 = vst [vmem:[#allocation26_spill] sm:$0xff] %v2701_v35 }
 0x119   :  { %v680_v24 = vpop.trf.xlu1 }
 0x11a   :  { %2039 = vmatprep.mubr.bf16.mxu1 %v680_v24 }
 0x1b3   :  { %v2649_v41 = vpop.f32.mrb[0].mxu0 }
 0x1b4   :  { %v2651_v42 = vpop.f32.mrb[1].mxu0  ;;  %v570_v52 = vmul.f32 %v2649_v41, %v2623_v63 }
 0x1b5   :  { %v2653_v45 = vpop.f32.mrb[2].mxu0  ;;  %v568_v55 = vmul.f32 %v2619_v59, %v2651_v42 }
 0x1b6   :  { %v571_v53 = vmul.f32 %v2653_v45, %v2625_v0  ;;  %v2659_v54 = vpop.f32.mrb[3].mxu0 }
 0x1b7   :  { %v569_v56 = vmul.f32 %v2621_v62, %v2659_v54 }
 0x1b8   :  { %v585_v24 = vpack.c.bf16 %v571_v53, %v570_v52 }
 0x1b9   :  { %v584_v25 = vpack.c.bf16 %v569_v56, %v568_v55 }
 0x1bb   :  { %v2665_v30 = vpop.f32.mrb[4].mxu0  ;;  %2023 = vmatprep.subr.bf16.mxu1 %v584_v25 }
 0x1bc   :  { %v2667_v31 = vpop.f32.mrb[5].mxu0  ;;  %2024 = vmatpush3.bf16.msra.mxu1 %v584_v25  ;;  %v574_v37 = vmul.f32 %v2665_v30, %v2631_v7 }
 0x1bd   :  { %v2669_v32 = vpop.f32.mrb[6].mxu0  ;;  %2025 = vmatprep.subr.bf16.mxu1 %v585_v24  ;;  %v572_v40 = vmul.f32 %v2627_v1, %v2667_v31 }
 0x1be   :  { %v575_v38 = vmul.f32 %v2669_v32, %v2633_v8  ;;  %v2675_v39 = vpop.f32.mrb[7].mxu0 }
 0x1bf   :  { %v573_v52 = vmul.f32 %v2629_v6, %v2675_v39 }
 0x1c0   :  { %v587_v53 = vpack.c.bf16 %v575_v38, %v574_v37  ;;  %2026 = vmatpush3.bf16.msra.mxu1 %v585_v24 }
 0x1c1   :  { %v586_v55 = vpack.c.bf16 %v573_v52, %v572_v40 }
 0x1c3   :  { %v2681_v56 = vpop.f32.mrb[8].mxu0  ;;  %2027 = vmatprep.subr.bf16.mxu1 %v586_v55 }
 0x1c4   :  { %v2683_v25 = vpop.f32.mrb[9].mxu0  ;;  %2028 = vmatpush3.bf16.msra.mxu1 %v586_v55  ;;  %v578_v34 = vmul.f32 %v2681_v56, %v2639_v15  ;;  %v681_v55 = vpop.trf.xlu1 }
 0x1c5   :  { %v2685_v27 = vpop.f32.mrb[10].mxu0  ;;  %2029 = vmatprep.subr.bf16.mxu1 %v587_v53  ;;  %v576_v24 = vmul.f32 %v2635_v9, %v2683_v25 }
 0x1c6   :  { %v579_v26 = vmul.f32 %v2685_v27, %v2641_v16  ;;  %v2691_v33 = vpop.f32.mrb[11].mxu0 }
 0x1c7   :  { %v577_v37 = vmul.f32 %v2637_v14, %v2691_v33 }
 0x1c8   :  { %v589_v38 = vpack.c.bf16 %v579_v26, %v578_v34  ;;  %2030 = vmatpush3.bf16.msra.mxu1 %v587_v53  ;;  %v682_v14 = vpop.trf.xlu1 }
 0x1c9   :  { %v588_v40 = vpack.c.bf16 %v577_v37, %v576_v24 }
 0x1cb   :  { %v2697_v52 = vpop.f32.mrb[12].mxu0  ;;  %2031 = vmatprep.subr.bf16.mxu1 %v588_v40 }
 0x1cc   :  { %v2699_v28 = vpop.f32.mrb[13].mxu0  ;;  %2032 = vmatpush3.bf16.msra.mxu1 %v588_v40  ;;  %v582_v36 = vmul.f32 %v2697_v52, %v2647_v23  ;;  %v683_v9 = vpop.trf.xlu1 }
 0x1cd   :  { %v2703_v29 = vpop.f32.mrb[14].mxu0  ;;  %2033 = vmatprep.subr.bf16.mxu1 %v589_v38  ;;  %v580_v53 = vmul.f32 %v2643_v17, %v2699_v28 }
 0x1ce   :  { %2994 = vst [vmem:[#allocation27_spill] sm:$0xff] %v2703_v29  ;;  %v583_v26 = vmul.f32 %v2703_v29, %v2701_v35  ;;  %v2709_v34 = vpop.f32.mrb[15].mxu0 }
 0x1cf   :  { %v581_v24 = vmul.f32 %v2645_v22, %v2709_v34 }
 0x1d0   :  { %v591_v37 = vpack.c.bf16 %v583_v26, %v582_v36  ;;  %2034 = vmatpush3.bf16.msra.mxu1 %v589_v38  ;;  %v684_v35 = vpop.trf.xlu1  ;;  %v961_v36 = vpop.trf.xlu0  ;;  %v2218_v38 = vld [vmem:[#allocation4] sm:$0xff]   ;;  %v2219_v26 = vld [vmem:[#allocation4 + $0x8] sm:$0xff]  }
 0x1d1   :  { %v590_v40 = vpack.c.bf16 %v581_v24, %v580_v53  ;;  %2071 = vmatprep.mubr.bf16.mxu0 %v961_v36  ;;  %1234 = vxpose.xlu1.c.b16.start [1/8] %v2218_v38, 128  ;;  %v2220_v53 = vld [vmem:[#allocation4 + $0x10] sm:$0xff]   ;;  %v2221_v24 = vld [vmem:[#allocation4 + $0x18] sm:$0xff]  }
 0x1d3   :  { %2035 = vmatprep.subr.bf16.mxu1 %v590_v40 }
 0x1d4   :  { %2036 = vmatpush3.bf16.msra.mxu1 %v590_v40  ;;  %v685_v23 = vpop.trf.xlu1 }
 0x1d5   :  { %2037 = vmatprep.subr.bf16.mxu1 %v591_v37  ;;  %1235 = vxpose.xlu1.c.b16.cont [2/8] %v2219_v26, 128 }
 0x1d8   :  { %2038 = vmatpush3.bf16.msra.mxu1 %v591_v37  ;;  %v686_v29 = vpop.trf.xlu1  ;;  %v425_v37 = vmul.f32 %v2659_v54, %v2501_v51 }
 0x1d9   :  { %1236 = vxpose.xlu1.c.b16.cont [3/8] %v2220_v53, 128 }
 0x1db   :  { %2040 = vmatmul.mubr.bf16.vlgmr.msra.gmra.mrb[0].mxu1 %v681_v55  ;;  %v427_v55 = vmul.f32 %v2653_v45, %v2499_v50 }
 0x1dc   :  { %2043 = vmatprep.mubr.bf16.mxu1 %v682_v14  ;;  %v687_v17 = vpop.trf.xlu1  ;;  %v2222_v14 = vld [vmem:[#allocation4 + $0x20] sm:$0xff]  }
 0x1dd   :  { %1237 = vxpose.xlu1.c.b16.cont [4/8] %v2221_v24, 128  ;;  %v443_v24 = vadd.f32 %v427_v55, %v2497_v49 }
 0x1e1   :  { %1238 = vxpose.xlu1.c.b16.cont [5/8] %v2222_v14, 128 }
 0x1e3   :  { %2044 = vmatmul.mubr.bf16.gmra.mrb[4].mxu1 %v683_v9  ;;  %v2223_v9 = vld [vmem:[#allocation4 + $0x28] sm:$0xff]  }
 0x1e4   :  { %2047 = vmatprep.mubr.bf16.mxu1 %v684_v35  ;;  %v2224_v35 = vld [vmem:[#allocation4 + $0x30] sm:$0xff]  }
 0x1e5   :  { %1239 = vxpose.xlu1.c.b16.cont [6/8] %v2223_v9, 128 }
 0x1e9   :  { %1240 = vxpose.xlu1.c.b16.cont [7/8] %v2224_v35, 128 }
 0x1eb   :  { %2048 = vmatmul.mubr.bf16.gmra.mrb[8].mxu1 %v685_v23  ;;  %v2225_v23 = vld [vmem:[#allocation4 + $0x38] sm:$0xff]  }
 0x1ec   :  { %2051 = vmatprep.mubr.bf16.mxu1 %v686_v29  ;;  %v426_v29 = vmul.f32 %v2649_v41, %v2475_v43  ;;  %v441_v41 = vadd.f32 %v425_v37, %v2487_v47 }
 0x1ed   :  { %1241 = vxpose.xlu1.c.b16.end [8/8] %v2225_v23, 128 }
 0x1ee   :  { %v442_v36 = vadd.f32 %v426_v29, %v2492_v48  ;;  %v430_v29 = vmul.f32 %v2665_v30, %v2541_v5 }
 0x1f3   :  { %2052 = vmatmul.mubr.bf16.gmra.mrb[12].mxu1 %v687_v17  ;;  %v424_v17 = vmul.f32 %v2651_v42, %v2477_v44 }
 0x1f5   :  { %v440_v53 = vadd.f32 %v424_v17, %v2482_v46  ;;  %v428_v17 = vmul.f32 %v2667_v31, %v2523_v61 }
 0x1f7   :  { %v444_v31 = vadd.f32 %v428_v17, %v2514_v57 }
 0x2ae   :  { %v2041_v40 = vpop.f32.mrb[0].mxu1 }
 0x2af   :  { %v803_v38 = vmul.f32 %v2041_v40, %v2475_v43  ;;  %v722_v26 = vpop.f32.mrb[1].mxu1  ;;  %v851_v45 = vmul.f32 %v2041_v40, %v2623_v63  ;;  %v431_v40 = vmul.f32 %v2669_v32, %v2539_v4 }
 0x2b0   :  { %v801_v42 = vmul.f32 %v722_v26, %v2477_v44  ;;  %v2042_v14 = vpop.f32.mrb[2].mxu1  ;;  %v849_v46 = vmul.f32 %v722_v26, %v2619_v59 }
 0x2b1   :  { %v2729_v9 = vadd.f32 %v803_v38, %v442_v36  ;;  %v804_v54 = vmul.f32 %v2042_v14, %v2499_v50  ;;  %v852_v48 = vmul.f32 %v2042_v14, %v2625_v0  ;;  %v725_v35 = vpop.f32.mrb[3].mxu1  ;;  %v429_v36 = vmul.f32 %v2675_v39, %v2521_v60 }
 0x2b2   :  { %v2734_v23 = vadd.f32 %v801_v42, %v440_v53  ;;  %v802_v49 = vmul.f32 %v725_v35, %v2501_v51  ;;  %v850_v47 = vmul.f32 %v725_v35, %v2621_v62  ;;  %v446_v42 = vadd.f32 %v430_v29, %v2532_v2 }
 0x2b3   :  { %v2743_v55 = vadd.f32 %v804_v54, %v443_v24  ;;  %v866_v37 = vpack.c.bf16 %v852_v48, %v851_v45  ;;  %v447_v24 = vadd.f32 %v431_v40, %v2537_v3  ;;  %v445_v32 = vadd.f32 %v429_v36, %v2519_v58 }
 0x2b4   :  { %v2749_v38 = vadd.f32 %v802_v49, %v441_v41  ;;  %v865_v26 = vpack.c.bf16 %v850_v47, %v849_v46  ;;  %v434_v49 = vmul.f32 %v2681_v56, %v2577_v21  ;;  %v432_v47 = vmul.f32 %v2683_v25, %v2559_v13 }
 0x2b5   :  { %v435_v40 = vmul.f32 %v2685_v27, %v2575_v20  ;;  %v433_v36 = vmul.f32 %v2691_v33, %v2557_v12 }
 0x2b6   :  { %v2045_v53 = vpop.f32.mrb[4].mxu1  ;;  %2055 = vmatprep.subr.bf16.mxu0 %v865_v26  ;;  %v450_v56 = vadd.f32 %v434_v49, %v2568_v18 }
 0x2b7   :  { %v807_v30 = vmul.f32 %v2045_v53, %v2541_v5  ;;  %v738_v14 = vpop.f32.mrb[5].mxu1  ;;  %2056 = vmatpush3.bf16.msra.mxu0 %v865_v26  ;;  %v855_v54 = vmul.f32 %v2045_v53, %v2631_v7  ;;  %v449_v27 = vadd.f32 %v433_v36, %v2555_v11  ;;  %v2996_v11 = vld [vmem:[#allocation23_spill] sm:$0xff] }
 0x2b8   :  { %v805_v45 = vmul.f32 %v738_v14, %v2523_v61  ;;  %v2046_v39 = vpop.f32.mrb[6].mxu1  ;;  %2057 = vmatprep.subr.bf16.mxu0 %v866_v37  ;;  %v853_v57 = vmul.f32 %v738_v14, %v2627_v1  ;;  %v448_v14 = vadd.f32 %v432_v47, %v2550_v10  ;;  %v2995_v10 = vld [vmem:[#allocation22_spill] sm:$0xff]  ;;  %v3000_v36 = vld [vmem:[#allocation27_spill] sm:$0xff] }
 0x2b9   :  { %v2757_v41 = vadd.f32 %v807_v30, %v446_v42  ;;  %v808_v2 = vmul.f32 %v2046_v39, %v2539_v4  ;;  %v856_v48 = vmul.f32 %v2046_v39, %v2633_v8  ;;  %v741_v35 = vpop.f32.mrb[7].mxu1 }
 0x2ba   :  { %v2762_v46 = vadd.f32 %v805_v45, %v444_v31  ;;  %v806_v3 = vmul.f32 %v741_v35, %v2521_v60  ;;  %v854_v58 = vmul.f32 %v741_v35, %v2629_v6  ;;  %v2997_v35 = vld [vmem:[#allocation21_spill] sm:$0xff] }
 0x2bb   :  { %v2771_v29 = vadd.f32 %v808_v2, %v447_v24  ;;  %v868_v17 = vpack.c.bf16 %v856_v48, %v855_v54  ;;  %2058 = vmatpush3.bf16.msra.mxu0 %v866_v37  ;;  %v451_v37 = vadd.f32 %v435_v40, %v2573_v19  ;;  %v2999_v40 = vld [vmem:[#allocation20_spill] sm:$0xff] }
 0x2bc   :  { %v2777_v26 = vadd.f32 %v806_v3, %v445_v32  ;;  %v867_v53 = vpack.c.bf16 %v854_v58, %v853_v57  ;;  %v438_v57 = vmul.f32 %v2697_v52, %v2997_v35  ;;  %v2998_v3 = vld [vmem:[#allocation17_spill] sm:$0xff]  ;;  %v3003_v52 = vld [vmem:[#allocation18_spill] sm:$0xff] }
 0x2bd   :  { %v436_v58 = vmul.f32 %v2699_v28, %v2998_v3 }
 0x2be   :  { %v2049_v42 = vpop.f32.mrb[8].mxu1  ;;  %2059 = vmatprep.subr.bf16.mxu0 %v867_v53 }
 0x2bf   :  { %v811_v30 = vmul.f32 %v2049_v42, %v2577_v21  ;;  %v754_v25 = vpop.f32.mrb[9].mxu1  ;;  %2060 = vmatpush3.bf16.msra.mxu0 %v867_v53  ;;  %v859_v32 = vmul.f32 %v2049_v42, %v2639_v15  ;;  %v439_v53 = vmul.f32 %v3000_v36, %v2999_v40  ;;  %v3001_v42 = vld [vmem:[#allocation16_spill] sm:$0xff] }
 0x2c0   :  { %v809_v31 = vmul.f32 %v754_v25, %v2559_v13  ;;  %v2050_v33 = vpop.f32.mrb[10].mxu1  ;;  %2061 = vmatprep.subr.bf16.mxu0 %v868_v17  ;;  %v857_v2 = vmul.f32 %v754_v25, %v2995_v10 }
 0x2c1   :  { %v2785_v24 = vadd.f32 %v811_v30, %v450_v56  ;;  %v812_v18 = vmul.f32 %v2050_v33, %v2575_v20  ;;  %v860_v45 = vmul.f32 %v2050_v33, %v2641_v16  ;;  %v757_v39 = vpop.f32.mrb[11].mxu1  ;;  %v437_v56 = vmul.f32 %v2709_v34, %v3001_v42 }
 0x2c2   :  { %v2790_v54 = vadd.f32 %v809_v31, %v448_v14  ;;  %v810_v19 = vmul.f32 %v757_v39, %v2557_v12  ;;  %v858_v48 = vmul.f32 %v757_v39, %v2996_v11  ;;  %v962_v31 = vpop.trf.xlu0  ;;  %v454_v33 = vadd.f32 %v438_v57, %v3003_v52  ;;  %v3006_v39 = vld [vmem:[#allocation15_spill] sm:$0xff]  ;;  %v3008_v52 = vld [vmem:[#allocation26_spill] sm:$0xff] }
 0x2c3   :  { %v2799_v49 = vadd.f32 %v812_v18, %v451_v37  ;;  %v870_v47 = vpack.c.bf16 %v860_v45, %v859_v32  ;;  %2062 = vmatpush3.bf16.msra.mxu0 %v868_v17  ;;  %v3004_v32 = vld [vmem:[#allocation14_spill] sm:$0xff]  ;;  %v3005_v18 = vld [vmem:[#allocation19_spill] sm:$0xff]  ;;  %v453_v36 = vadd.f32 %v437_v56, %v3006_v39 }
 0x2c4   :  { %v2805_v30 = vadd.f32 %v810_v19, %v449_v27  ;;  %v869_v25 = vpack.c.bf16 %v858_v48, %v857_v2  ;;  %v452_v17 = vadd.f32 %v436_v58, %v3004_v32  ;;  %v455_v45 = vadd.f32 %v439_v53, %v3005_v18  ;;  %v3007_v19 = vld [vmem:[#allocation25_spill] sm:$0xff]  ;;  %v3009_v58 = vld [vmem:[#allocation24_spill] sm:$0xff] }
 0x2c6   :  { %3002 = vst [vmem:[#allocation22_spill] sm:$0xff] %v2805_v30  ;;  %v2053_v14 = vpop.f32.mrb[12].mxu1  ;;  %2063 = vmatprep.subr.bf16.mxu0 %v869_v25 }
 0x2c7   :  { %v815_v28 = vmul.f32 %v2053_v14, %v2997_v35  ;;  %v770_v37 = vpop.f32.mrb[13].mxu1  ;;  %2064 = vmatpush3.bf16.msra.mxu0 %v869_v25  ;;  %v863_v48 = vmul.f32 %v2053_v14, %v3007_v19 }
 0x2c8   :  { %v813_v34 = vmul.f32 %v770_v37, %v2998_v3  ;;  %v2054_v27 = vpop.f32.mrb[14].mxu1  ;;  %2065 = vmatprep.subr.bf16.mxu0 %v870_v47  ;;  %v861_v32 = vmul.f32 %v770_v37, %v3009_v58 }
 0x2c9   :  { %v2813_v2 = vadd.f32 %v815_v28, %v454_v33  ;;  %v816_v57 = vmul.f32 %v2054_v27, %v2999_v40  ;;  %v864_v35 = vmul.f32 %v2054_v27, %v3008_v52  ;;  %v773_v30 = vpop.f32.mrb[15].mxu1  ;;  %v963_v28 = vpop.trf.xlu0 }
 0x2ca   :  { %v2818_v25 = vadd.f32 %v813_v34, %v452_v17  ;;  %v814_v53 = vmul.f32 %v773_v30, %v3001_v42  ;;  %v862_v56 = vmul.f32 %v773_v30, %v2645_v22  ;;  %v2228_v34 = vld [vmem:[#allocation7 + $0x10] sm:$0xff]  }
 0x2cb   :  { %v2823_v18 = vadd.f32 %v816_v57, %v455_v45  ;;  %v872_v39 = vpack.c.bf16 %v864_v35, %v863_v48  ;;  %2066 = vmatpush3.bf16.msra.mxu0 %v870_v47  ;;  %v1242_v47 = vpop.trf.xlu1  ;;  %v2226_v45 = vld [vmem:[#allocation7] sm:$0xff]   ;;  %v2231_v57 = vld [vmem:[#allocation7 + $0x28] sm:$0xff]  }
 0x2cc   :  { %v2825_v33 = vadd.f32 %v814_v53, %v453_v36  ;;  %v871_v14 = vpack.c.bf16 %v862_v56, %v861_v32  ;;  %2103 = vmatprep.mubr.bf16.mxu1 %v1242_v47  ;;  %v2227_v36 = vld [vmem:[#allocation7 + $0x8] sm:$0xff]   ;;  %v2230_v48 = vld [vmem:[#allocation7 + $0x20] sm:$0xff]  }
 0x2cd   :  { %v964_v27 = vpop.trf.xlu0 }
 0x2ce   :  { %2067 = vmatprep.subr.bf16.mxu0 %v871_v14 }
 0x2cf   :  { %2068 = vmatpush3.bf16.msra.mxu0 %v871_v14 }
 0x2d0   :  { %2069 = vmatprep.subr.bf16.mxu0 %v872_v39 }
 0x2d1   :  { %v965_v37 = vpop.trf.xlu0 }
 0x2d3   :  { %2070 = vmatpush3.bf16.msra.mxu0 %v872_v39 }
 0x2d4   :  { %2119 = vmatprep.subr.bf16.mxu0 %v2226_v45 }
 0x2d5   :  { %v966_v17 = vpop.trf.xlu0 }
 0x2d6   :  { %2072 = vmatmul.mubr.bf16.vlgmr.msra.gmra.mrb[16].mxu0 %v962_v31  ;;  %v2229_v31 = vld [vmem:[#allocation7 + $0x18] sm:$0xff]  }
 0x2d7   :  { %2075 = vmatprep.mubr.bf16.mxu0 %v963_v28  ;;  %2120 = vmatpush3.bf16.msra.mxu0 %v2226_v45 }
 0x2d8   :  { %2121 = vmatprep.subr.bf16.mxu0 %v2227_v36 }
 0x2d9   :  { %v967_v30 = vpop.trf.xlu0 }
 0x2db   :  { %2122 = vmatpush3.bf16.msra.mxu0 %v2227_v36 }
 0x2dc   :  { %2123 = vmatprep.subr.bf16.mxu0 %v2228_v34 }
 0x2dd   :  { %v968_v35 = vpop.trf.xlu0 }
 0x2de   :  { %2076 = vmatmul.mubr.bf16.gmra.mrb[20].mxu0 %v964_v27 }
 0x2df   :  { %2079 = vmatprep.mubr.bf16.mxu0 %v965_v37  ;;  %2124 = vmatpush3.bf16.msra.mxu0 %v2228_v34 }
 0x2e0   :  { %2125 = vmatprep.subr.bf16.mxu0 %v2229_v31 }
 0x2e3   :  { %2126 = vmatpush3.bf16.msra.mxu0 %v2229_v31 }
 0x2e4   :  { %2127 = vmatprep.subr.bf16.mxu0 %v2230_v48 }
 0x2e6   :  { %2080 = vmatmul.mubr.bf16.gmra.mrb[24].mxu0 %v966_v17 }
 0x2e7   :  { %2083 = vmatprep.mubr.bf16.mxu0 %v967_v30  ;;  %2128 = vmatpush3.bf16.msra.mxu0 %v2230_v48 }
 0x2e8   :  { %2129 = vmatprep.subr.bf16.mxu0 %v2231_v57 }
 0x2eb   :  { %2130 = vmatpush3.bf16.msra.mxu0 %v2231_v57 }
 0x2ee   :  { %2084 = vmatmul.mubr.bf16.gmra.mrb[28].mxu0 %v968_v35 }
 0x3a9   :  { %v2073_v32 = vpop.f32.mrb[16].mxu0 }
 0x3aa   :  { %v1084_v53 = vmul.f32 %v2073_v32, %v2475_v43  ;;  %v1003_v56 = vpop.f32.mrb[17].mxu0  ;;  %v1132_v27 = vmul.f32 %v2073_v32, %v2623_v63 }
 0x3ab   :  { %v1082_v39 = vmul.f32 %v1003_v56, %v2477_v44  ;;  %v2074_v14 = vpop.f32.mrb[18].mxu0  ;;  %v1130_v47 = vmul.f32 %v1003_v56, %v2619_v59 }
 0x3ac   :  { %v2830_v28 = vadd.f32 %v1084_v53, %v2729_v9  ;;  %v1085_v37 = vmul.f32 %v2074_v14, %v2499_v50  ;;  %v1133_v17 = vmul.f32 %v2074_v14, %v2625_v0  ;;  %v1006_v30 = vpop.f32.mrb[19].mxu0 }
 0x3ad   :  { %v2836_v35 = vadd.f32 %v1082_v39, %v2734_v23  ;;  %v1083_v45 = vmul.f32 %v1006_v30, %v2501_v51  ;;  %v1131_v36 = vmul.f32 %v1006_v30, %v2621_v62 }
 0x3ae   :  { %v2842_v34 = vadd.f32 %v1085_v37, %v2743_v55  ;;  %v1147_v9 = vpack.c.bf16 %v1133_v17, %v1132_v27 }
 0x3af   :  { %v2845_v63 = vadd.f32 %v1083_v45, %v2749_v38  ;;  %v1146_v31 = vpack.c.bf16 %v1131_v36, %v1130_v47 }
 0x3b1   :  { %v2077_v48 = vpop.f32.mrb[20].mxu0  ;;  %2087 = vmatprep.subr.bf16.mxu1 %v1146_v31 }
 0x3b2   :  { %v1088_v0 = vmul.f32 %v2077_v48, %v2541_v5  ;;  %v1019_v23 = vpop.f32.mrb[21].mxu0  ;;  %2088 = vmatpush3.bf16.msra.mxu1 %v1146_v31  ;;  %v1136_v55 = vmul.f32 %v2077_v48, %v2631_v7 }
 0x3b3   :  { %v1086_v59 = vmul.f32 %v1019_v23, %v2523_v61  ;;  %v2078_v57 = vpop.f32.mrb[22].mxu0  ;;  %2089 = vmatprep.subr.bf16.mxu1 %v1147_v9  ;;  %v1134_v39 = vmul.f32 %v1019_v23, %v2627_v1 }
 0x3b4   :  { %v2850_v62 = vadd.f32 %v1088_v0, %v2757_v41  ;;  %v1089_v32 = vmul.f32 %v2078_v57, %v2539_v4  ;;  %v1137_v38 = vmul.f32 %v2078_v57, %v2633_v8  ;;  %v1022_v53 = vpop.f32.mrb[23].mxu0 }
 0x3b5   :  { %v2856_v56 = vadd.f32 %v1086_v59, %v2762_v46  ;;  %v1087_v14 = vmul.f32 %v1022_v53, %v2521_v60  ;;  %v1135_v27 = vmul.f32 %v1022_v53, %v2629_v6 }
 0x3b6   :  { %v2862_v37 = vadd.f32 %v1089_v32, %v2771_v29  ;;  %v1149_v41 = vpack.c.bf16 %v1137_v38, %v1136_v55  ;;  %2090 = vmatpush3.bf16.msra.mxu1 %v1147_v9  ;;  %v1243_v55 = vpop.trf.xlu1 }
 0x3b7   :  { %v2865_v7 = vadd.f32 %v1087_v14, %v2777_v26  ;;  %v1148_v17 = vpack.c.bf16 %v1135_v27, %v1134_v39 }
 0x3b9   :  { %v2081_v8 = vpop.f32.mrb[24].mxu0  ;;  %2091 = vmatprep.subr.bf16.mxu1 %v1148_v17 }
 0x3ba   :  { %v1092_v46 = vmul.f32 %v2081_v8, %v2577_v21  ;;  %v1035_v30 = vpop.f32.mrb[25].mxu0  ;;  %2092 = vmatpush3.bf16.msra.mxu1 %v1148_v17  ;;  %v1140_v29 = vmul.f32 %v2081_v8, %v2639_v15  ;;  %v3010_v15 = vld [vmem:[#allocation22_spill] sm:$0xff] }
 0x3bb   :  { %v1090_v1 = vmul.f32 %v1035_v30, %v2559_v13  ;;  %v2082_v47 = vpop.f32.mrb[26].mxu0  ;;  %2093 = vmatprep.subr.bf16.mxu1 %v1149_v41  ;;  %v1138_v31 = vmul.f32 %v1035_v30, %v2995_v10 }
 0x3bc   :  { %v2870_v6 = vadd.f32 %v1092_v46, %v2785_v24  ;;  %v1093_v45 = vmul.f32 %v2082_v47, %v2575_v20  ;;  %v1141_v26 = vmul.f32 %v2082_v47, %v2641_v16  ;;  %v1038_v36 = vpop.f32.mrb[27].mxu0 }
 0x3bd   :  { %v2876_v9 = vadd.f32 %v1090_v1, %v2790_v54  ;;  %v1091_v48 = vmul.f32 %v1038_v36, %v2557_v12  ;;  %v1139_v0 = vmul.f32 %v1038_v36, %v2996_v11  ;;  %v3011_v54 = vld [vmem:[#allocation21_spill] sm:$0xff]  ;;  %v2236_v36 = vld [vmem:[#allocation9 + $0x10] sm:$0xff]  }
 0x3be   :  { %v2882_v23 = vadd.f32 %v1093_v45, %v2799_v49  ;;  %v1151_v24 = vpack.c.bf16 %v1141_v26, %v1140_v29  ;;  %2094 = vmatpush3.bf16.msra.mxu1 %v1149_v41  ;;  %v2233_v29 = vld [vmem:[#allocation7 + $0x38] sm:$0xff]   ;;  %v2234_v45 = vld [vmem:[#allocation9] sm:$0xff]   ;;  %v2235_v26 = vld [vmem:[#allocation9 + $0x8] sm:$0xff]  }
 0x3bf   :  { %v2885_v59 = vadd.f32 %v1091_v48, %v3010_v15  ;;  %v1150_v57 = vpack.c.bf16 %v1139_v0, %v1138_v31  ;;  %v2237_v31 = vld [vmem:[#allocation9 + $0x18] sm:$0xff]   ;;  %v2238_v48 = vld [vmem:[#allocation9 + $0x20] sm:$0xff]   ;;  %v2239_v0 = vld [vmem:[#allocation9 + $0x28] sm:$0xff]  }
 0x3c1   :  { %v2085_v16 = vpop.f32.mrb[28].mxu0  ;;  %2095 = vmatprep.subr.bf16.mxu1 %v1150_v57 }
 0x3c2   :  { %v1096_v32 = vmul.f32 %v2085_v16, %v3011_v54  ;;  %v1051_v38 = vpop.f32.mrb[29].mxu0  ;;  %2096 = vmatpush3.bf16.msra.mxu1 %v1150_v57  ;;  %v1144_v49 = vmul.f32 %v2085_v16, %v3007_v19 }
 0x3c3   :  { %v1094_v10 = vmul.f32 %v1051_v38, %v2998_v3  ;;  %v2086_v53 = vpop.f32.mrb[30].mxu0  ;;  %2097 = vmatprep.subr.bf16.mxu1 %v1151_v24  ;;  %v1142_v17 = vmul.f32 %v1051_v38, %v3009_v58 }
 0x3c4   :  { %v2890_v11 = vadd.f32 %v1096_v32, %v2813_v2  ;;  %v1097_v39 = vmul.f32 %v2086_v53, %v2999_v40  ;;  %v1145_v14 = vmul.f32 %v2086_v53, %v3008_v52  ;;  %v1054_v27 = vpop.f32.mrb[31].mxu0  ;;  %v1244_v52 = vpop.trf.xlu1 }
 0x3c5   :  { %v2896_v41 = vadd.f32 %v1094_v10, %v2818_v25  ;;  %v1095_v8 = vmul.f32 %v1054_v27, %v3001_v42  ;;  %v1143_v46 = vmul.f32 %v1054_v27, %v2645_v22 }
 0x3c6   :  { %v2902_v30 = vadd.f32 %v1097_v39, %v2823_v18  ;;  %v1153_v2 = vpack.c.bf16 %v1145_v14, %v1144_v49  ;;  %2098 = vmatpush3.bf16.msra.mxu1 %v1151_v24 }
 0x3c7   :  { %v2905_v19 = vadd.f32 %v1095_v8, %v2825_v33  ;;  %v1152_v1 = vpack.c.bf16 %v1143_v46, %v1142_v17  ;;  %v2232_v33 = vld [vmem:[#allocation7 + $0x30] sm:$0xff]  }
 0x3c8   :  { %v1245_v25 = vpop.trf.xlu1  ;;  %2131 = vmatprep.subr.bf16.mxu0 %v2232_v33 }
 0x3c9   :  { %2099 = vmatprep.subr.bf16.mxu1 %v1152_v1  ;;  %2132 = vmatpush3.bf16.msra.mxu0 %v2232_v33 }
 0x3ca   :  { %2100 = vmatpush3.bf16.msra.mxu1 %v1152_v1  ;;  %2133 = vmatprep.subr.bf16.mxu0 %v2233_v29 }
 0x3cb   :  { %2101 = vmatprep.subr.bf16.mxu1 %v1153_v2 }
 0x3cc   :  { %v1246_v58 = vpop.trf.xlu1 }
 0x3cd   :  { %2134 = vmatpush3.bf16.msra.mxu0 %v2233_v29 }
 0x3ce   :  { %2102 = vmatpush3.bf16.msra.mxu1 %v1153_v2 }
 0x3cf   :  { %2151 = vmatprep.subr.bf16.mxu1 %v2234_v45 }
 0x3d0   :  { %v1247_v22 = vpop.trf.xlu1 }
 0x3d1   :  { %2104 = vmatmul.mubr.bf16.vlgmr.msra.gmra.mrb[16].mxu1 %v1243_v55 }
 0x3d2   :  { %2107 = vmatprep.mubr.bf16.mxu1 %v1244_v52  ;;  %2152 = vmatpush3.bf16.msra.mxu1 %v2234_v45 }
 0x3d3   :  { %2153 = vmatprep.subr.bf16.mxu1 %v2235_v26 }
 0x3d4   :  { %v1248_v18 = vpop.trf.xlu1 }
 0x3d6   :  { %2154 = vmatpush3.bf16.msra.mxu1 %v2235_v26 }
 0x3d7   :  { %2155 = vmatprep.subr.bf16.mxu1 %v2236_v36 }
 0x3d8   :  { %v1249_v47 = vpop.trf.xlu1 }
 0x3d9   :  { %2108 = vmatmul.mubr.bf16.gmra.mrb[20].mxu1 %v1245_v25 }
 0x3da   :  { %2111 = vmatprep.mubr.bf16.mxu1 %v1246_v58  ;;  %2156 = vmatpush3.bf16.msra.mxu1 %v2236_v36 }
 0x3db   :  { %2157 = vmatprep.subr.bf16.mxu1 %v2237_v31 }
 0x3de   :  { %2158 = vmatpush3.bf16.msra.mxu1 %v2237_v31 }
 0x3df   :  { %2159 = vmatprep.subr.bf16.mxu1 %v2238_v48 }
 0x3e1   :  { %2112 = vmatmul.mubr.bf16.gmra.mrb[24].mxu1 %v1247_v22 }
 0x3e2   :  { %2115 = vmatprep.mubr.bf16.mxu1 %v1248_v18  ;;  %2160 = vmatpush3.bf16.msra.mxu1 %v2238_v48 }
 0x3e3   :  { %2161 = vmatprep.subr.bf16.mxu1 %v2239_v0 }
 0x3e6   :  { %2162 = vmatpush3.bf16.msra.mxu1 %v2239_v0 }
 0x3e9   :  { %2116 = vmatmul.mubr.bf16.gmra.mrb[28].mxu1 %v1249_v47 }
 0x4a4   :  { %v2105_v24 = vpop.f32.mrb[16].mxu1 }
 0x4a5   :  { %v1365_v15 = vmul.f32 %v2105_v24, %v2475_v43  ;;  %v1284_v57 = vpop.f32.mrb[17].mxu1 }
 0x4a6   :  { %v1363_v16 = vmul.f32 %v1284_v57, %v2477_v44  ;;  %v2106_v55 = vpop.f32.mrb[18].mxu1 }
 0x4a7   :  { %v1381_v32 = vadd.f32 %v1365_v15, %v2830_v28  ;;  %v1366_v38 = vmul.f32 %v2106_v55, %v2499_v50  ;;  %v1287_v10 = vpop.f32.mrb[19].mxu1 }
 0x4a8   :  { %v1379_v53 = vadd.f32 %v1363_v16, %v2836_v35  ;;  %v1364_v49 = vmul.f32 %v1287_v10, %v2501_v51 }
 0x4a9   :  { %v1382_v39 = vadd.f32 %v1366_v38, %v2842_v34 }
 0x4aa   :  { %v1380_v14 = vadd.f32 %v1364_v49, %v2845_v63 }
 0x4ab   :  { %v1460_v27 = vpack.c.bf16 %v1382_v39, %v1381_v32 }
 0x4ac   :  { %v2109_v17 = vpop.f32.mrb[20].mxu1  ;;  %v1459_v43 = vpack.c.bf16 %v1380_v14, %v1379_v53 }
 0x4ad   :  { %v1369_v8 = vmul.f32 %v2109_v17, %v2541_v5  ;;  %v1300_v44 = vpop.f32.mrb[21].mxu1 }
 0x4ae   :  { %v1367_v46 = vmul.f32 %v1300_v44, %v2523_v61  ;;  %v2110_v28 = vpop.f32.mrb[22].mxu1  ;;  %2135 = vmatprep.mubr.bf16.mxu0 %v1459_v43 }
 0x4af   :  { %v1385_v50 = vadd.f32 %v1369_v8, %v2850_v62  ;;  %v1370_v35 = vmul.f32 %v2110_v28, %v2539_v4  ;;  %v1303_v2 = vpop.f32.mrb[23].mxu1  ;;  %2136 = vmatmul.mubr.bf16.vlgmr.msra.gmra.mrb[32].mxu0 %v1460_v27 }
 0x4b0   :  { %v1383_v51 = vadd.f32 %v1367_v46, %v2856_v56  ;;  %v1368_v34 = vmul.f32 %v1303_v2, %v2521_v60 }
 0x4b1   :  { %v1386_v63 = vadd.f32 %v1370_v35, %v2862_v37 }
 0x4b2   :  { %v1384_v1 = vadd.f32 %v1368_v34, %v2865_v7 }
 0x4b3   :  { %v1462_v5 = vpack.c.bf16 %v1386_v63, %v1385_v50 }
 0x4b4   :  { %v2113_v52 = vpop.f32.mrb[24].mxu1  ;;  %v1461_v25 = vpack.c.bf16 %v1384_v1, %v1383_v51 }
 0x4b5   :  { %v1373_v61 = vmul.f32 %v2113_v52, %v2577_v21  ;;  %v1316_v58 = vpop.f32.mrb[25].mxu1 }
 0x4b6   :  { %v1371_v62 = vmul.f32 %v1316_v58, %v2559_v13  ;;  %v2114_v22 = vpop.f32.mrb[26].mxu1  ;;  %2139 = vmatprep.mubr.bf16.mxu0 %v1461_v25 }
 0x4b7   :  { %v1389_v4 = vadd.f32 %v1373_v61, %v2870_v6  ;;  %v1374_v56 = vmul.f32 %v2114_v22, %v2575_v20  ;;  %v1319_v18 = vpop.f32.mrb[27].mxu1  ;;  %2140 = vmatmul.mubr.bf16.gmra.mrb[36].mxu0 %v1462_v5 }
 0x4b8   :  { %v1387_v60 = vadd.f32 %v1371_v62, %v2876_v9  ;;  %v1372_v37 = vmul.f32 %v1319_v18, %v2557_v12 }
 0x4b9   :  { %v1390_v7 = vadd.f32 %v1374_v56, %v2882_v23 }
 0x4ba   :  { %v1388_v47 = vadd.f32 %v1372_v37, %v2885_v59 }
 0x4bb   :  { %v1464_v21 = vpack.c.bf16 %v1390_v7, %v1389_v4 }
 0x4bc   :  { %v2117_v33 = vpop.f32.mrb[28].mxu1  ;;  %v1463_v29 = vpack.c.bf16 %v1388_v47, %v1387_v60 }
 0x4bd   :  { %v1377_v13 = vmul.f32 %v2117_v33, %v3011_v54  ;;  %v1332_v45 = vpop.f32.mrb[29].mxu1 }
 0x4be   :  { %v1375_v6 = vmul.f32 %v1332_v45, %v2998_v3  ;;  %v2118_v26 = vpop.f32.mrb[30].mxu1  ;;  %2143 = vmatprep.mubr.bf16.mxu0 %v1463_v29  ;;  %v2240_v3 = vld [vmem:[#allocation9 + $0x30] sm:$0xff]  }
 0x4bf   :  { %v1393_v20 = vadd.f32 %v1377_v13, %v2890_v11  ;;  %v1378_v9 = vmul.f32 %v2118_v26, %v2999_v40  ;;  %v1335_v36 = vpop.f32.mrb[31].mxu1  ;;  %2144 = vmatmul.mubr.bf16.gmra.mrb[40].mxu0 %v1464_v21  ;;  %2163 = vmatprep.subr.bf16.mxu1 %v2240_v3  ;;  %v2241_v11 = vld [vmem:[#allocation9 + $0x38] sm:$0xff]  }
 0x4c0   :  { %v1391_v12 = vadd.f32 %v1375_v6, %v2896_v41  ;;  %v1376_v23 = vmul.f32 %v1335_v36, %v3001_v42  ;;  %2164 = vmatpush3.bf16.msra.mxu1 %v2240_v3 }
 0x4c1   :  { %v1394_v59 = vadd.f32 %v1378_v9, %v2902_v30  ;;  %2165 = vmatprep.subr.bf16.mxu1 %v2241_v11 }
 0x4c2   :  { %v1392_v31 = vadd.f32 %v1376_v23, %v2905_v19 }
 0x4c3   :  { %v1466_v54 = vpack.c.bf16 %v1394_v59, %v1393_v20 }
 0x4c4   :  { %v1465_v48 = vpack.c.bf16 %v1392_v31, %v1391_v12  ;;  %2166 = vmatpush3.bf16.msra.mxu1 %v2241_v11 }
 0x4c6   :  { %2147 = vmatprep.mubr.bf16.mxu0 %v1465_v48 }
 0x4c7   :  { %2148 = vmatmul.mubr.bf16.gmra.mrb[44].mxu0 %v1466_v54 }
 0x582   :  { %v2137_v40 = vpop.f32.mrb[32].mxu0 }
 0x583   :  { %v1565_v0 = vpop.f32.mrb[33].mxu0  ;;  %v1630_v41 = vmax.f32 %v2137_v40, 0.0 }
 0x584   :  { %v2138_v24 = vpop.f32.mrb[34].mxu0  ;;  %v1628_v57 = vmax.f32 %v1565_v0, 0.0 }
 0x585   :  { %v1631_v15 = vmax.f32 %v2138_v24, 0.0  ;;  %v1568_v42 = vpop.f32.mrb[35].mxu0 }
 0x586   :  { %v1629_v30 = vmax.f32 %v1568_v42, 0.0 }
 0x587   :  { %v1645_v16 = vpack.c.bf16 %v1631_v15, %v1630_v41 }
 0x588   :  { %v1644_v19 = vpack.c.bf16 %v1629_v30, %v1628_v57 }
 0x58a   :  { %v2141_v55 = vpop.f32.mrb[36].mxu0  ;;  %2167 = vmatprep.mubr.bf16.mxu1 %v1644_v19 }
 0x58b   :  { %v1581_v32 = vpop.f32.mrb[37].mxu0  ;;  %2168 = vmatmul.mubr.bf16.vlgmr.msra.gmra.mrb[32].mxu1 %v1645_v16  ;;  %v1634_v10 = vmax.f32 %v2141_v55, 0.0 }
 0x58c   :  { %v2142_v38 = vpop.f32.mrb[38].mxu0  ;;  %v1632_v39 = vmax.f32 %v1581_v32, 0.0 }
 0x58d   :  { %v1635_v53 = vmax.f32 %v2142_v38, 0.0  ;;  %v1584_v49 = vpop.f32.mrb[39].mxu0 }
 0x58e   :  { %v1633_v14 = vmax.f32 %v1584_v49, 0.0 }
 0x58f   :  { %v1647_v27 = vpack.c.bf16 %v1635_v53, %v1634_v10 }
 0x590   :  { %v1646_v17 = vpack.c.bf16 %v1633_v14, %v1632_v39 }
 0x592   :  { %v2145_v43 = vpop.f32.mrb[40].mxu0  ;;  %2171 = vmatprep.mubr.bf16.mxu1 %v1646_v17 }
 0x593   :  { %v1597_v8 = vpop.f32.mrb[41].mxu0  ;;  %2172 = vmatmul.mubr.bf16.gmra.mrb[36].mxu1 %v1647_v27  ;;  %v1638_v46 = vmax.f32 %v2145_v43, 0.0 }
 0x594   :  { %v2146_v44 = vpop.f32.mrb[42].mxu0  ;;  %v1636_v35 = vmax.f32 %v1597_v8, 0.0 }
 0x595   :  { %v1639_v28 = vmax.f32 %v2146_v44, 0.0  ;;  %v1600_v50 = vpop.f32.mrb[43].mxu0 }
 0x596   :  { %v1637_v2 = vmax.f32 %v1600_v50, 0.0 }
 0x597   :  { %v1649_v51 = vpack.c.bf16 %v1639_v28, %v1638_v46 }
 0x598   :  { %v1648_v34 = vpack.c.bf16 %v1637_v2, %v1636_v35 }
 0x59a   :  { %v2149_v63 = vpop.f32.mrb[44].mxu0  ;;  %2175 = vmatprep.mubr.bf16.mxu1 %v1648_v34 }
 0x59b   :  { %v1613_v1 = vpop.f32.mrb[45].mxu0  ;;  %2176 = vmatmul.mubr.bf16.gmra.mrb[40].mxu1 %v1649_v51  ;;  %v1642_v52 = vmax.f32 %v2149_v63, 0.0 }
 0x59c   :  { %v2150_v5 = vpop.f32.mrb[46].mxu0  ;;  %v1640_v58 = vmax.f32 %v1613_v1, 0.0 }
 0x59d   :  { %v1643_v25 = vmax.f32 %v2150_v5, 0.0  ;;  %v1616_v61 = vpop.f32.mrb[47].mxu0 }
 0x59e   :  { %v1641_v62 = vmax.f32 %v1616_v61, 0.0 }
 0x59f   :  { %v1651_v22 = vpack.c.bf16 %v1643_v25, %v1642_v52 }
 0x5a0   :  { %v1650_v4 = vpack.c.bf16 %v1641_v62, %v1640_v58 }
 0x5a2   :  { %2179 = vmatprep.mubr.bf16.mxu1 %v1650_v4 }
 0x5a3   :  { %2180 = vmatmul.mubr.bf16.gmra.mrb[44].mxu1 %v1651_v22 }
 0x65e   :  { %v2169_v56 = vpop.f32.mrb[32].mxu1 }
 0x65f   :  { %1815 = vst [vmem:[#allocation10 + $0x10] sm:$0xff] %v2169_v56  ;;  %v1750_v18 = vpop.f32.mrb[33].mxu1 }
 0x660   :  { %1813 = vst [vmem:[#allocation10] sm:$0xff] %v1750_v18  ;;  %v2170_v60 = vpop.f32.mrb[34].mxu1 }
 0x661   :  { %1816 = vst [vmem:[#allocation10 + $0x18] sm:$0xff] %v2170_v60  ;;  %v1753_v37 = vpop.f32.mrb[35].mxu1 }
 0x662   :  { %1814 = vst [vmem:[#allocation10 + $0x8] sm:$0xff] %v1753_v37 }
 0x666   :  { %v2173_v7 = vpop.f32.mrb[36].mxu1 }
 0x667   :  { %1819 = vst [vmem:[#allocation10 + $0x30] sm:$0xff] %v2173_v7  ;;  %v1766_v47 = vpop.f32.mrb[37].mxu1 }
 0x668   :  { %1817 = vst [vmem:[#allocation10 + $0x20] sm:$0xff] %v1766_v47  ;;  %v2174_v21 = vpop.f32.mrb[38].mxu1 }
 0x669   :  { %1820 = vst [vmem:[#allocation10 + $0x38] sm:$0xff] %v2174_v21  ;;  %v1769_v33 = vpop.f32.mrb[39].mxu1 }
 0x66a   :  { %1818 = vst [vmem:[#allocation10 + $0x28] sm:$0xff] %v1769_v33 }
 0x66e   :  { %v2177_v29 = vpop.f32.mrb[40].mxu1 }
 0x66f   :  { %1823 = vst [vmem:[#allocation10 + $0x50] sm:$0xff] %v2177_v29  ;;  %v1782_v13 = vpop.f32.mrb[41].mxu1 }
 0x670   :  { %1821 = vst [vmem:[#allocation10 + $0x40] sm:$0xff] %v1782_v13  ;;  %v2178_v45 = vpop.f32.mrb[42].mxu1 }
 0x671   :  { %1824 = vst [vmem:[#allocation10 + $0x58] sm:$0xff] %v2178_v45  ;;  %v1785_v6 = vpop.f32.mrb[43].mxu1 }
 0x672   :  { %1822 = vst [vmem:[#allocation10 + $0x48] sm:$0xff] %v1785_v6 }
 0x676   :  { %v2181_v26 = vpop.f32.mrb[44].mxu1 }
 0x677   :  { %1827 = vst [vmem:[#allocation10 + $0x70] sm:$0xff] %v2181_v26  ;;  %v1798_v20 = vpop.f32.mrb[45].mxu1 }
 0x678   :  { %1825 = vst [vmem:[#allocation10 + $0x60] sm:$0xff] %v1798_v20  ;;  %v2182_v9 = vpop.f32.mrb[46].mxu1 }
 0x679   :  { %1828 = vst [vmem:[#allocation10 + $0x78] sm:$0xff] %v2182_v9  ;;  %v1801_v36 = vpop.f32.mrb[47].mxu1 }
 0x67a   :  { %1826 = vst [vmem:[#allocation10 + $0x68] sm:$0xff] %v1801_v36 }
 0x67b   :  { %2319 = shalt.err (!%p2316_p0)
}
 0x67c   :  { %s2320_s13 = scalar_lea.hbm %s2956_s5, 2048 }
 0x67d   :  { %p2321_p1 = scmp.ne.s32.totalorder %s2956_s5, %s2320_s13  ;;  %p2324_p2 = scmp.lt.u32.totalorder %s2320_s13, %s2956_s5 }
 0x67f   :  { %p2326_p3 = pnand %p2324_p2, %p2321_p1 }
 0x681   :  { %2329 = shalt.err (!%p2326_p3)
}
 0x682   :  { %s2343_s17 = smov 128   ;;  %s2344_s18 = smov 8  }
 0x683   :  { %1840 = dma.vmem_to_hbm [thread:$0]  %s1835_s4, 2048, %s2956_s5, [#allocation6], %s2343_s17, %s2343_s17, %s2344_s18  }
 0x684   :  { %2334 = dma.done.wait [#allocation6], 2048  }
 0x685   :  { %2335 = vsyncadd [#allocation6], 4294965248 }
 0x686   :  { %1844 = vsyncpa [#allocation5], 1 }
 0x687   :  { %1845 = vsyncpa [#allocation8], 1 }
 0x688   :  { %1846 = vsyncpa [#allocation6], 1 }

</bundles_post_ra>
